<compile_context>
chip_gen: v5e
topology: v5e:2x2
jax: 0.10.0
libtpu: 0.0.40
codegen_flags: <defaults>
</compile_context>

<pallas_src>
import functools
import math

import numpy as np
import jax
import jax.numpy as jnp
from jax.experimental import pallas as pl
from jax.experimental.pallas import tpu as pltpu


# ----------------------------------------------------------------------------
# In-kernel helpers
# ----------------------------------------------------------------------------
def _layer_norm(x, gamma, beta, eps=1e-5):
    mu = jnp.mean(x, axis=-1, keepdims=True)
    var = jnp.mean((x - mu) ** 2, axis=-1, keepdims=True)
    return (x - mu) * jax.lax.rsqrt(var + eps) * gamma + beta


def _erf_poly(x):
    # Abramowitz & Stegun 7.1.26 (max abs error ~1.5e-7).  Uses only exp /
    # mul / add / where, all of which lower on every Mosaic version, while
    # preserving PyTorch's exact-erf GELU semantics to float32 noise level.
    a1, a2, a3, a4, a5 = (0.254829592, -0.284496736, 1.421413741,
                          -1.453152027, 1.061405429)
    p = 0.3275911
    sign = jnp.where(x >= 0, 1.0, -1.0)
    ax = jnp.abs(x)
    t = 1.0 / (1.0 + p * ax)
    poly = ((((a5 * t + a4) * t + a3) * t + a2) * t + a1) * t
    return sign * (1.0 - poly * jnp.exp(-ax * ax))


def _gelu_exact(x):
    return 0.5 * x * (1.0 + _erf_poly(x * (1.0 / math.sqrt(2.0))))


# ----------------------------------------------------------------------------
# Fused kernel: PE add + full transformer encoder stack, one batch element
# per grid step.  Weights are stacked (num_layers, ...) and resident in VMEM.
# ----------------------------------------------------------------------------
def _fused_encoder_kernel(x_ref, pe_ref, hb_ref,
                          wqkv_ref, bqkv_ref, wo_ref, bo_ref,
                          w1_ref, b1_ref, w2_ref, b2_ref,
                          g1_ref, be1_ref, g2_ref, be2_ref,
                          o_ref, *, n_head, mm_dtype):
    h = x_ref[0].astype(jnp.float32) + pe_ref[...].astype(jnp.float32)  # (L, D)
    L, D = h.shape
    Dh = D // n_head
    num_layers = wqkv_ref.shape[0]
    head_bias = hb_ref[...]                          # (HL, HL): 0 / -1e30 block-diag

    for li in range(num_layers):                     # static unroll; weights resident
        wqkv = wqkv_ref[li]; bqkv = bqkv_ref[li]
        wo = wo_ref[li];     bo = bo_ref[li]
        w1 = w1_ref[li];     b1 = b1_ref[li]
        w2 = w2_ref[li];     b2 = b2_ref[li]
        g1 = g1_ref[li];     be1 = be1_ref[li]
        g2 = g2_ref[li];     be2 = be2_ref[li]

        # --- self attention (1/sqrt(Dh) pre-folded into the Q columns) ------
        qkv = jnp.dot(h.astype(mm_dtype), wqkv.astype(mm_dtype),
                      preferred_element_type=jnp.float32) + bqkv       # (L, 3D)
        q = qkv[:, :D]
        k = qkv[:, D:2 * D]
        v = qkv[:, 2 * D:]

        # Sublane-stack heads: (n_head*L, Dh).  Whole-head attention is then
        # TWO MXU matmuls + a precomputed additive block-diagonal mask.
        qs = jnp.concatenate([q[:, hh * Dh:(hh + 1) * Dh] for hh in range(n_head)], axis=0)
        ks = jnp.concatenate([k[:, hh * Dh:(hh + 1) * Dh] for hh in range(n_head)], axis=0)
        vs = jnp.concatenate([v[:, hh * Dh:(hh + 1) * Dh] for hh in range(n_head)], axis=0)

        s = jax.lax.dot_general(qs.astype(mm_dtype), ks.astype(mm_dtype),
                                (((1,), (1,)), ((), ())),
                                preferred_element_type=jnp.float32)     # (HL, HL)
        s = s + head_bias                                               # mask cross-head
        s = s - jnp.max(s, axis=-1, keepdims=True)
        p = jnp.exp(s)
        p = p * pl.reciprocal(jnp.sum(p, axis=-1, keepdims=True), approx=True)
        pv = jnp.dot(p.astype(mm_dtype), vs.astype(mm_dtype),
                     preferred_element_type=jnp.float32)                # (HL, Dh)

        # Un-stack heads back onto lanes, single output-projection matmul.
        attn = jnp.concatenate([pv[hh * L:(hh + 1) * L, :] for hh in range(n_head)],
                               axis=1)                                   # (L, D)
        attn = jnp.dot(attn.astype(mm_dtype), wo.astype(mm_dtype),
                       preferred_element_type=jnp.float32) + bo

        # --- residual + layernorm 1 (post-norm, PyTorch default) ------------
        h = _layer_norm(h + attn, g1, be1)

        # --- feed forward (exact-erf GELU) -----------------------------------
        f = jnp.dot(h.astype(mm_dtype), w1.astype(mm_dtype),
                    preferred_element_type=jnp.float32) + b1
        f = _gelu_exact(f)
        f = jnp.dot(f.astype(mm_dtype), w2.astype(mm_dtype),
                    preferred_element_type=jnp.float32) + b2

        # --- residual + layernorm 2 ------------------------------------------
        h = _layer_norm(h + f, g2, be2)

    # TODO(synk): D=32 (<128 lanes) makes this a masked store; a lane-dense
    # (1, 1, L*D) output layout needs an in-kernel (L, D)->(L*D,) relayout
    # reshape whose Mosaic support is version-dependent, so it is skipped at
    # these toy widths.
    o_ref[0] = h.astype(o_ref.dtype)


# ----------------------------------------------------------------------------
# Wrapper: embedding gather in plain JAX, one fused pallas_call for the rest.
# ----------------------------------------------------------------------------
def four_hot_encoder_forward(x, params, *, n_head, mm_dtype=jnp.float32):
    """x: (B, L, 4) float in [0, 1). Returns (B, L, d_model)."""
    # TODO(synk): src_key_padding_mask support not implemented (mask=None path only).
    att_sizes = params["att_sizes"]
    idxs = (x * att_sizes).astype(jnp.int32)          # .long() truncation
    # TODO(synk): PyTorch nn.Embedding raises on out-of-range indices; jnp.take
    # clips to the last row instead (inputs here are strictly in [0, 1)).
    lat_e = jnp.take(params["lat_emb"], idxs[..., 0], axis=0)
    lon_e = jnp.take(params["lon_emb"], idxs[..., 1], axis=0)
    sog_e = jnp.take(params["sog_emb"], idxs[..., 2], axis=0)
    cog_e = jnp.take(params["cog_emb"], idxs[..., 3], axis=0)
    token_e = jnp.concatenate([lat_e, lon_e, sog_e, cog_e], axis=-1)   # (B, L, D)

    B, L, D = token_e.shape
    pe = params["pe"][:L]                              # (L, D); dropout = identity (eval)

    lay = params["layers"]
    num_layers = lay["wqkv"].shape[0]
    F = lay["w1"].shape[-1]
    HL = n_head * L

    # Precomputed additive block-diagonal head mask (0 on same-head blocks,
    # -1e30 elsewhere) -> exp underflows to exactly 0 for cross-head scores.
    hb = np.full((HL, HL), -1e30, np.float32)
    for hh in range(n_head):
        hb[hh * L:(hh + 1) * L, hh * L:(hh + 1) * L] = 0.0
    head_bias = jnp.asarray(hb)

    kernel = functools.partial(_fused_encoder_kernel, n_head=n_head, mm_dtype=mm_dtype)

    def _const(shape):
        n = len(shape)
        return pl.BlockSpec(shape, lambda b, _n=n: (0,) * _n)

    in_specs = [
        pl.BlockSpec((1, L, D), lambda b: (b, 0, 0)),        # token embeddings
        _const((L, D)),                                      # positional encoding
        _const((HL, HL)),                                    # head mask bias
        _const((num_layers, D, 3 * D)), _const((num_layers, 1, 3 * D)),   # wqkv, bqkv
        _const((num_layers, D, D)),     _const((num_layers, 1, D)),       # wo, bo
        _const((num_layers, D, F)),     _const((num_layers, 1, F)),       # w1, b1
        _const((num_layers, F, D)),     _const((num_layers, 1, D)),       # w2, b2
        _const((num_layers, 1, D)),     _const((num_layers, 1, D)),       # ln1 g, b
        _const((num_layers, 1, D)),     _const((num_layers, 1, D)),       # ln2 g, b
    ]
    return pl.pallas_call(
        kernel,
        out_shape=jax.ShapeDtypeStruct((B, L, D), token_e.dtype),
        grid=(B,),
        in_specs=in_specs,
        out_specs=pl.BlockSpec((1, L, D), lambda b: (b, 0, 0)),
        compiler_params=pltpu.CompilerParams(
            dimension_semantics=("parallel",),        # shards B across v7x's 2 TCs
            vmem_limit_bytes=16 * 1024 * 1024),       # explicit; safe on v5e/v6e/v7x
    )(token_e, pe, head_bias,
      lay["wqkv"], lay["bqkv"], lay["wo"], lay["bo"],
      lay["w1"], lay["b1"], lay["w2"], lay["b2"],
      lay["g1"], lay["beta1"], lay["g2"], lay["beta2"])


# ----------------------------------------------------------------------------
# Parameter setup (plain JAX / numpy)
# ----------------------------------------------------------------------------
def _make_pe(max_len, d_model):
    position = np.arange(max_len, dtype=np.float32)[:, None]
    div_term = np.exp(np.arange(0, d_model, 2, dtype=np.float32)
                      * (-math.log(10000.0) / d_model))
    pe = np.zeros((max_len, d_model), np.float32)
    pe[:, 0::2] = np.sin(position * div_term)
    pe[:, 1::2] = np.cos(position * div_term)
    return jnp.asarray(pe)


def init_params(key, *, lat_size, lon_size, sog_size, cog_size,
                n_lat, n_lon, n_sog, n_cog, n_head, num_layers, dim_ff, max_len):
    D = n_lat + n_lon + n_sog + n_cog
    assert D % n_head == 0
    scale = 1.0 / math.sqrt(D // n_head)
    keys = jax.random.split(key, 4 + num_layers)

    def xavier(k, shape):
        fan_in, fan_out = shape
        bound = math.sqrt(6.0 / (fan_in + fan_out))
        return jax.random.uniform(k, shape, jnp.float32, -bound, bound)

    params = {
        "att_sizes": jnp.array([lat_size, lon_size, sog_size, cog_size], jnp.float32),
        "lat_emb": jax.random.normal(keys[0], (lat_size, n_lat), jnp.float32),
        "lon_emb": jax.random.normal(keys[1], (lon_size, n_lon), jnp.float32),
        "sog_emb": jax.random.normal(keys[2], (sog_size, n_sog), jnp.float32),
        "cog_emb": jax.random.normal(keys[3], (cog_size, n_cog), jnp.float32),
        "pe": _make_pe(max_len, D),
    }

    wqkv_l, wo_l, w1_l, w2_l = [], [], [], []
    for i in range(num_layers):
        lk = jax.random.split(keys[4 + i], 4)
        # Weights are stored pre-transposed so the kernel computes x @ W, and the
        # 1/sqrt(Dh) attention scale is folded into the Q columns (and would be
        # folded into the Q bias if it were non-zero / ported from PyTorch).
        wqkv = xavier(lk[0], (D, 3 * D))
        wqkv = wqkv.at[:, :D].multiply(scale)
        wqkv_l.append(wqkv)
        wo_l.append(xavier(lk[1], (D, D)))
        w1_l.append(xavier(lk[2], (D, dim_ff)))
        w2_l.append(xavier(lk[3], (dim_ff, D)))

    params["layers"] = {
        "wqkv": jnp.stack(wqkv_l), "bqkv": jnp.zeros((num_layers, 1, 3 * D), jnp.float32),
        "wo": jnp.stack(wo_l),     "bo": jnp.zeros((num_layers, 1, D), jnp.float32),
        "w1": jnp.stack(w1_l),     "b1": jnp.zeros((num_layers, 1, dim_ff), jnp.float32),
        "w2": jnp.stack(w2_l),     "b2": jnp.zeros((num_layers, 1, D), jnp.float32),
        "g1": jnp.ones((num_layers, 1, D), jnp.float32),
        "beta1": jnp.zeros((num_layers, 1, D), jnp.float32),
        "g2": jnp.ones((num_layers, 1, D), jnp.float32),
        "beta2": jnp.zeros((num_layers, 1, D), jnp.float32),
    }
    return params


# ----------------------------------------------------------------------------
# Main
# ----------------------------------------------------------------------------
if __name__ == "__main__":
    B, L = 2, 8
    lat_size, lon_size, sog_size, cog_size = 16, 16, 8, 8
    n_lat = n_lon = n_sog = n_cog = 8          # d_model = 32
    n_head = 4
    num_layers = 2
    dim_ff = 64
    max_len = 64

    key = jax.random.PRNGKey(0)
    kp, kx = jax.random.split(key)
    params = init_params(kp,
                         lat_size=lat_size, lon_size=lon_size,
                         sog_size=sog_size, cog_size=cog_size,
                         n_lat=n_lat, n_lon=n_lon, n_sog=n_sog, n_cog=n_cog,
                         n_head=n_head, num_layers=num_layers,
                         dim_ff=dim_ff, max_len=max_len)

    x = jax.random.uniform(kx, (B, L, 4), jnp.float32, 0.0, 1.0)

    # mm_dtype=jnp.bfloat16 gives full-rate MXU on v6e/v7x at realistic widths;
    # kept at f32 here so toy-shape numerics match the PyTorch f32 reference.
    out = four_hot_encoder_forward(x, params, n_head=n_head, mm_dtype=jnp.float32)
    out = jax.block_until_ready(out)

    assert out.shape == (B, L, n_lat + n_lon + n_sog + n_cog)
    assert bool(jnp.all(jnp.isfinite(out)))
    print("KERNEL_OK")
</pallas_src>

<mosaic_0001>
module attributes {stable_mosaic.version = 11 : i64} {
  func.func @_fused_encoder_kernel(%arg0: i32, %arg1: memref<1x8x32xf32, #tpu.memory_space<vmem>>, %arg2: memref<8x32xf32, #tpu.memory_space<vmem>>, %arg3: memref<32x32xf32, #tpu.memory_space<vmem>>, %arg4: memref<2x32x96xf32, #tpu.memory_space<vmem>>, %arg5: memref<2x1x96xf32, #tpu.memory_space<vmem>>, %arg6: memref<2x32x32xf32, #tpu.memory_space<vmem>>, %arg7: memref<2x1x32xf32, #tpu.memory_space<vmem>>, %arg8: memref<2x32x64xf32, #tpu.memory_space<vmem>>, %arg9: memref<2x1x64xf32, #tpu.memory_space<vmem>>, %arg10: memref<2x64x32xf32, #tpu.memory_space<vmem>>, %arg11: memref<2x1x32xf32, #tpu.memory_space<vmem>>, %arg12: memref<2x1x32xf32, #tpu.memory_space<vmem>>, %arg13: memref<2x1x32xf32, #tpu.memory_space<vmem>>, %arg14: memref<2x1x32xf32, #tpu.memory_space<vmem>>, %arg15: memref<2x1x32xf32, #tpu.memory_space<vmem>>, %arg16: memref<1x8x32xf32, #tpu.memory_space<vmem>>) attributes {dimension_semantics = [#tpu.dimension_semantics<parallel>], iteration_bounds = array<i64: 2>, scalar_prefetch = 0 : i64, scratch_operands = 0 : i64, tpu.core_type = #tpu.core_type<tc>, window_params = [{transform_indices = @transform_0, window_bounds = array<i64: 1, 8, 32>}, {pipeline_mode = #tpu.pipeline_mode<synchronous>, transform_indices = @transform_1, window_bounds = array<i64: 8, 32>}, {pipeline_mode = #tpu.pipeline_mode<synchronous>, transform_indices = @transform_2, window_bounds = array<i64: 32, 32>}, {pipeline_mode = #tpu.pipeline_mode<synchronous>, transform_indices = @transform_3, window_bounds = array<i64: 2, 32, 96>}, {pipeline_mode = #tpu.pipeline_mode<synchronous>, transform_indices = @transform_4, window_bounds = array<i64: 2, 1, 96>}, {pipeline_mode = #tpu.pipeline_mode<synchronous>, transform_indices = @transform_5, window_bounds = array<i64: 2, 32, 32>}, {pipeline_mode = #tpu.pipeline_mode<synchronous>, transform_indices = @transform_6, window_bounds = array<i64: 2, 1, 32>}, {pipeline_mode = #tpu.pipeline_mode<synchronous>, transform_indices = @transform_7, window_bounds = array<i64: 2, 32, 64>}, {pipeline_mode = #tpu.pipeline_mode<synchronous>, transform_indices = @transform_8, window_bounds = array<i64: 2, 1, 64>}, {pipeline_mode = #tpu.pipeline_mode<synchronous>, transform_indices = @transform_9, window_bounds = array<i64: 2, 64, 32>}, {pipeline_mode = #tpu.pipeline_mode<synchronous>, transform_indices = @transform_10, window_bounds = array<i64: 2, 1, 32>}, {pipeline_mode = #tpu.pipeline_mode<synchronous>, transform_indices = @transform_11, window_bounds = array<i64: 2, 1, 32>}, {pipeline_mode = #tpu.pipeline_mode<synchronous>, transform_indices = @transform_12, window_bounds = array<i64: 2, 1, 32>}, {pipeline_mode = #tpu.pipeline_mode<synchronous>, transform_indices = @transform_13, window_bounds = array<i64: 2, 1, 32>}, {pipeline_mode = #tpu.pipeline_mode<synchronous>, transform_indices = @transform_14, window_bounds = array<i64: 2, 1, 32>}, {transform_indices = @transform_15, window_bounds = array<i64: 1, 8, 32>}]} {
    %c0 = arith.constant 0 : index
    %c0_0 = arith.constant 0 : index
    %c0_1 = arith.constant 0 : index
    %0 = vector.load %arg1[%c0, %c0_0, %c0_1] : memref<1x8x32xf32, #tpu.memory_space<vmem>>, vector<1x8x32xf32>
    %1 = vector.shape_cast %0 : vector<1x8x32xf32> to vector<8x32xf32>
    %c0_2 = arith.constant 0 : index
    %c0_3 = arith.constant 0 : index
    %2 = vector.load %arg2[%c0_2, %c0_3] : memref<8x32xf32, #tpu.memory_space<vmem>>, vector<8x32xf32>
    %3 = arith.addf %1, %2 : vector<8x32xf32>
    %c0_4 = arith.constant 0 : index
    %c0_5 = arith.constant 0 : index
    %4 = vector.load %arg3[%c0_4, %c0_5] : memref<32x32xf32, #tpu.memory_space<vmem>>, vector<32x32xf32>
    %c0_6 = arith.constant 0 : index
    %c0_7 = arith.constant 0 : index
    %c0_8 = arith.constant 0 : index
    %5 = vector.load %arg4[%c0_6, %c0_7, %c0_8] : memref<2x32x96xf32, #tpu.memory_space<vmem>>, vector<1x32x96xf32>
    %6 = vector.shape_cast %5 : vector<1x32x96xf32> to vector<32x96xf32>
    %c0_9 = arith.constant 0 : index
    %c0_10 = arith.constant 0 : index
    %c0_11 = arith.constant 0 : index
    %7 = vector.load %arg5[%c0_9, %c0_10, %c0_11] : memref<2x1x96xf32, #tpu.memory_space<vmem>>, vector<1x1x96xf32>
    %8 = vector.shape_cast %7 : vector<1x1x96xf32> to vector<1x96xf32>
    %c0_12 = arith.constant 0 : index
    %c0_13 = arith.constant 0 : index
    %c0_14 = arith.constant 0 : index
    %9 = vector.load %arg6[%c0_12, %c0_13, %c0_14] : memref<2x32x32xf32, #tpu.memory_space<vmem>>, vector<1x32x32xf32>
    %10 = vector.shape_cast %9 : vector<1x32x32xf32> to vector<32x32xf32>
    %c0_15 = arith.constant 0 : index
    %c0_16 = arith.constant 0 : index
    %c0_17 = arith.constant 0 : index
    %11 = vector.load %arg7[%c0_15, %c0_16, %c0_17] : memref<2x1x32xf32, #tpu.memory_space<vmem>>, vector<1x1x32xf32>
    %12 = vector.shape_cast %11 : vector<1x1x32xf32> to vector<1x32xf32>
    %c0_18 = arith.constant 0 : index
    %c0_19 = arith.constant 0 : index
    %c0_20 = arith.constant 0 : index
    %13 = vector.load %arg8[%c0_18, %c0_19, %c0_20] : memref<2x32x64xf32, #tpu.memory_space<vmem>>, vector<1x32x64xf32>
    %14 = vector.shape_cast %13 : vector<1x32x64xf32> to vector<32x64xf32>
    %c0_21 = arith.constant 0 : index
    %c0_22 = arith.constant 0 : index
    %c0_23 = arith.constant 0 : index
    %15 = vector.load %arg9[%c0_21, %c0_22, %c0_23] : memref<2x1x64xf32, #tpu.memory_space<vmem>>, vector<1x1x64xf32>
    %16 = vector.shape_cast %15 : vector<1x1x64xf32> to vector<1x64xf32>
    %c0_24 = arith.constant 0 : index
    %c0_25 = arith.constant 0 : index
    %c0_26 = arith.constant 0 : index
    %17 = vector.load %arg10[%c0_24, %c0_25, %c0_26] : memref<2x64x32xf32, #tpu.memory_space<vmem>>, vector<1x64x32xf32>
    %18 = vector.shape_cast %17 : vector<1x64x32xf32> to vector<64x32xf32>
    %c0_27 = arith.constant 0 : index
    %c0_28 = arith.constant 0 : index
    %c0_29 = arith.constant 0 : index
    %19 = vector.load %arg11[%c0_27, %c0_28, %c0_29] : memref<2x1x32xf32, #tpu.memory_space<vmem>>, vector<1x1x32xf32>
    %20 = vector.shape_cast %19 : vector<1x1x32xf32> to vector<1x32xf32>
    %c0_30 = arith.constant 0 : index
    %c0_31 = arith.constant 0 : index
    %c0_32 = arith.constant 0 : index
    %21 = vector.load %arg12[%c0_30, %c0_31, %c0_32] : memref<2x1x32xf32, #tpu.memory_space<vmem>>, vector<1x1x32xf32>
    %22 = vector.shape_cast %21 : vector<1x1x32xf32> to vector<1x32xf32>
    %c0_33 = arith.constant 0 : index
    %c0_34 = arith.constant 0 : index
    %c0_35 = arith.constant 0 : index
    %23 = vector.load %arg13[%c0_33, %c0_34, %c0_35] : memref<2x1x32xf32, #tpu.memory_space<vmem>>, vector<1x1x32xf32>
    %24 = vector.shape_cast %23 : vector<1x1x32xf32> to vector<1x32xf32>
    %c0_36 = arith.constant 0 : index
    %c0_37 = arith.constant 0 : index
    %c0_38 = arith.constant 0 : index
    %25 = vector.load %arg14[%c0_36, %c0_37, %c0_38] : memref<2x1x32xf32, #tpu.memory_space<vmem>>, vector<1x1x32xf32>
    %26 = vector.shape_cast %25 : vector<1x1x32xf32> to vector<1x32xf32>
    %c0_39 = arith.constant 0 : index
    %c0_40 = arith.constant 0 : index
    %c0_41 = arith.constant 0 : index
    %27 = vector.load %arg15[%c0_39, %c0_40, %c0_41] : memref<2x1x32xf32, #tpu.memory_space<vmem>>, vector<1x1x32xf32>
    %28 = vector.shape_cast %27 : vector<1x1x32xf32> to vector<1x32xf32>
    %cst = arith.constant dense<0.000000e+00> : vector<8x96xf32>
    %29 = tpu.matmul %3, %6, %cst {dimension_numbers = #tpu.dot_dimension_numbers<[1], [0], [0], [1], [0, 0, 1, 1], [], []>} : vector<8x32xf32>, vector<32x96xf32>, vector<8x96xf32> -> vector<8x96xf32>
    %30 = vector.broadcast %8 : vector<1x96xf32> to vector<8x96xf32>
    %31 = arith.addf %29, %30 : vector<8x96xf32>
    %32 = vector.extract_strided_slice %31 {offsets = [0, 0], sizes = [8, 32], strides = [1, 1]} : vector<8x96xf32> to vector<8x32xf32>
    %33 = vector.extract_strided_slice %31 {offsets = [0, 32], sizes = [8, 32], strides = [1, 1]} : vector<8x96xf32> to vector<8x32xf32>
    %34 = vector.extract_strided_slice %31 {offsets = [0, 64], sizes = [8, 32], strides = [1, 1]} : vector<8x96xf32> to vector<8x32xf32>
    %35 = vector.extract_strided_slice %32 {offsets = [0, 0], sizes = [8, 8], strides = [1, 1]} : vector<8x32xf32> to vector<8x8xf32>
    %36 = vector.extract_strided_slice %32 {offsets = [0, 8], sizes = [8, 8], strides = [1, 1]} : vector<8x32xf32> to vector<8x8xf32>
    %37 = vector.extract_strided_slice %32 {offsets = [0, 16], sizes = [8, 8], strides = [1, 1]} : vector<8x32xf32> to vector<8x8xf32>
    %38 = vector.extract_strided_slice %32 {offsets = [0, 24], sizes = [8, 8], strides = [1, 1]} : vector<8x32xf32> to vector<8x8xf32>
    %39 = tpu.concatenate %35, %36, %37, %38 in 0 : vector<8x8xf32>, vector<8x8xf32>, vector<8x8xf32>, vector<8x8xf32> -> vector<32x8xf32>
    %40 = vector.extract_strided_slice %33 {offsets = [0, 0], sizes = [8, 8], strides = [1, 1]} : vector<8x32xf32> to vector<8x8xf32>
    %41 = vector.extract_strided_slice %33 {offsets = [0, 8], sizes = [8, 8], strides = [1, 1]} : vector<8x32xf32> to vector<8x8xf32>
    %42 = vector.extract_strided_slice %33 {offsets = [0, 16], sizes = [8, 8], strides = [1, 1]} : vector<8x32xf32> to vector<8x8xf32>
    %43 = vector.extract_strided_slice %33 {offsets = [0, 24], sizes = [8, 8], strides = [1, 1]} : vector<8x32xf32> to vector<8x8xf32>
    %44 = tpu.concatenate %40, %41, %42, %43 in 0 : vector<8x8xf32>, vector<8x8xf32>, vector<8x8xf32>, vector<8x8xf32> -> vector<32x8xf32>
    %45 = vector.extract_strided_slice %34 {offsets = [0, 0], sizes = [8, 8], strides = [1, 1]} : vector<8x32xf32> to vector<8x8xf32>
    %46 = vector.extract_strided_slice %34 {offsets = [0, 8], sizes = [8, 8], strides = [1, 1]} : vector<8x32xf32> to vector<8x8xf32>
    %47 = vector.extract_strided_slice %34 {offsets = [0, 16], sizes = [8, 8], strides = [1, 1]} : vector<8x32xf32> to vector<8x8xf32>
    %48 = vector.extract_strided_slice %34 {offsets = [0, 24], sizes = [8, 8], strides = [1, 1]} : vector<8x32xf32> to vector<8x8xf32>
    %49 = tpu.concatenate %45, %46, %47, %48 in 0 : vector<8x8xf32>, vector<8x8xf32>, vector<8x8xf32>, vector<8x8xf32> -> vector<32x8xf32>
    %cst_42 = arith.constant dense<0.000000e+00> : vector<32x32xf32>
    %50 = tpu.matmul %39, %44, %cst_42 {dimension_numbers = #tpu.dot_dimension_numbers<[1], [1], [0], [0], [0, 0, 1, 0], [], []>} : vector<32x8xf32>, vector<32x8xf32>, vector<32x32xf32> -> vector<32x32xf32>
    %51 = arith.addf %50, %4 : vector<32x32xf32>
    %cst_43 = arith.constant dense<0xFF800000> : vector<32xf32>
    %52 = vector.multi_reduction <maximumf>, %51, %cst_43 [1] : vector<32x32xf32> to vector<32xf32>
    %53 = vector.shape_cast %52 : vector<32xf32> to vector<32x1xf32>
    %54 = vector.broadcast %53 : vector<32x1xf32> to vector<32x32xf32>
    %55 = arith.subf %51, %54 : vector<32x32xf32>
    %56 = math.exp %55 : vector<32x32xf32>
    %cst_44 = arith.constant dense<0.000000e+00> : vector<32xf32>
    %57 = vector.multi_reduction <add>, %56, %cst_44 [1] : vector<32x32xf32> to vector<32xf32>
    %58 = vector.shape_cast %57 : vector<32xf32> to vector<32x1xf32>
    %59 = tpu.reciprocal %58 {approx = true} : vector<32x1xf32> -> vector<32x1xf32>
    %60 = vector.broadcast %59 : vector<32x1xf32> to vector<32x32xf32>
    %61 = arith.mulf %56, %60 : vector<32x32xf32>
    %cst_45 = arith.constant dense<0.000000e+00> : vector<32x8xf32>
    %62 = tpu.matmul %61, %49, %cst_45 {dimension_numbers = #tpu.dot_dimension_numbers<[1], [0], [0], [1], [0, 0, 1, 1], [], []>} : vector<32x32xf32>, vector<32x8xf32>, vector<32x8xf32> -> vector<32x8xf32>
    %63 = vector.extract_strided_slice %62 {offsets = [0, 0], sizes = [8, 8], strides = [1, 1]} : vector<32x8xf32> to vector<8x8xf32>
    %64 = vector.extract_strided_slice %62 {offsets = [8, 0], sizes = [8, 8], strides = [1, 1]} : vector<32x8xf32> to vector<8x8xf32>
    %65 = vector.extract_strided_slice %62 {offsets = [16, 0], sizes = [8, 8], strides = [1, 1]} : vector<32x8xf32> to vector<8x8xf32>
    %66 = vector.extract_strided_slice %62 {offsets = [24, 0], sizes = [8, 8], strides = [1, 1]} : vector<32x8xf32> to vector<8x8xf32>
    %67 = tpu.concatenate %63, %64, %65, %66 in 1 : vector<8x8xf32>, vector<8x8xf32>, vector<8x8xf32>, vector<8x8xf32> -> vector<8x32xf32>
    %cst_46 = arith.constant dense<0.000000e+00> : vector<8x32xf32>
    %68 = tpu.matmul %67, %10, %cst_46 {dimension_numbers = #tpu.dot_dimension_numbers<[1], [0], [0], [1], [0, 0, 1, 1], [], []>} : vector<8x32xf32>, vector<32x32xf32>, vector<8x32xf32> -> vector<8x32xf32>
    %69 = vector.broadcast %12 : vector<1x32xf32> to vector<8x32xf32>
    %70 = arith.addf %68, %69 : vector<8x32xf32>
    %71 = arith.addf %3, %70 : vector<8x32xf32>
    %cst_47 = arith.constant dense<0.000000e+00> : vector<8xf32>
    %72 = vector.multi_reduction <add>, %71, %cst_47 [1] : vector<8x32xf32> to vector<8xf32>
    %73 = vector.shape_cast %72 : vector<8xf32> to vector<8x1xf32>
    %cst_48 = arith.constant 3.200000e+01 : f32
    %74 = vector.broadcast %cst_48 : f32 to vector<8x1xf32>
    %75 = arith.divf %73, %74 : vector<8x1xf32>
    %76 = vector.broadcast %75 : vector<8x1xf32> to vector<8x32xf32>
    %77 = arith.subf %71, %76 : vector<8x32xf32>
    %78 = arith.mulf %77, %77 : vector<8x32xf32>
    %cst_49 = arith.constant dense<0.000000e+00> : vector<8xf32>
    %79 = vector.multi_reduction <add>, %78, %cst_49 [1] : vector<8x32xf32> to vector<8xf32>
    %80 = vector.shape_cast %79 : vector<8xf32> to vector<8x1xf32>
    %cst_50 = arith.constant 3.200000e+01 : f32
    %81 = vector.broadcast %cst_50 : f32 to vector<8x1xf32>
    %82 = arith.divf %80, %81 : vector<8x1xf32>
    %83 = vector.broadcast %75 : vector<8x1xf32> to vector<8x32xf32>
    %84 = arith.subf %71, %83 : vector<8x32xf32>
    %cst_51 = arith.constant 9.99999974E-6 : f32
    %85 = vector.broadcast %cst_51 : f32 to vector<8x1xf32>
    %86 = arith.addf %82, %85 : vector<8x1xf32>
    %87 = math.rsqrt %86 : vector<8x1xf32>
    %88 = vector.broadcast %87 : vector<8x1xf32> to vector<8x32xf32>
    %89 = arith.mulf %84, %88 : vector<8x32xf32>
    %90 = vector.broadcast %22 : vector<1x32xf32> to vector<8x32xf32>
    %91 = arith.mulf %89, %90 : vector<8x32xf32>
    %92 = vector.broadcast %24 : vector<1x32xf32> to vector<8x32xf32>
    %93 = arith.addf %91, %92 : vector<8x32xf32>
    %cst_52 = arith.constant dense<0.000000e+00> : vector<8x64xf32>
    %94 = tpu.matmul %93, %14, %cst_52 {dimension_numbers = #tpu.dot_dimension_numbers<[1], [0], [0], [1], [0, 0, 1, 1], [], []>} : vector<8x32xf32>, vector<32x64xf32>, vector<8x64xf32> -> vector<8x64xf32>
    %95 = vector.broadcast %16 : vector<1x64xf32> to vector<8x64xf32>
    %96 = arith.addf %94, %95 : vector<8x64xf32>
    %cst_53 = arith.constant 5.000000e-01 : f32
    %97 = vector.broadcast %cst_53 : f32 to vector<8x64xf32>
    %98 = arith.mulf %97, %96 : vector<8x64xf32>
    %cst_54 = arith.constant 0.707106769 : f32
    %99 = vector.broadcast %cst_54 : f32 to vector<8x64xf32>
    %100 = arith.mulf %96, %99 : vector<8x64xf32>
    %cst_55 = arith.constant 0.000000e+00 : f32
    %101 = vector.broadcast %cst_55 : f32 to vector<8x64xf32>
    %102 = arith.cmpf oge, %100, %101 : vector<8x64xf32>
    %cst_56 = arith.constant 1.000000e+00 : f32
    %cst_57 = arith.constant -1.000000e+00 : f32
    %103 = vector.broadcast %cst_56 : f32 to vector<8x64xf32>
    %104 = vector.broadcast %cst_57 : f32 to vector<8x64xf32>
    %105 = arith.select %102, %103, %104 : vector<8x64xi1>, vector<8x64xf32>
    %106 = math.absf %100 : vector<8x64xf32>
    %cst_58 = arith.constant 0.327591091 : f32
    %107 = vector.broadcast %cst_58 : f32 to vector<8x64xf32>
    %108 = arith.mulf %107, %106 : vector<8x64xf32>
    %cst_59 = arith.constant 1.000000e+00 : f32
    %109 = vector.broadcast %cst_59 : f32 to vector<8x64xf32>
    %110 = arith.addf %109, %108 : vector<8x64xf32>
    %cst_60 = arith.constant 1.000000e+00 : f32
    %111 = vector.broadcast %cst_60 : f32 to vector<8x64xf32>
    %112 = arith.divf %111, %110 : vector<8x64xf32>
    %cst_61 = arith.constant 1.06140542 : f32
    %113 = vector.broadcast %cst_61 : f32 to vector<8x64xf32>
    %114 = arith.mulf %113, %112 : vector<8x64xf32>
    %cst_62 = arith.constant -1.45315206 : f32
    %115 = vector.broadcast %cst_62 : f32 to vector<8x64xf32>
    %116 = arith.addf %114, %115 : vector<8x64xf32>
    %117 = arith.mulf %116, %112 : vector<8x64xf32>
    %cst_63 = arith.constant 1.42141378 : f32
    %118 = vector.broadcast %cst_63 : f32 to vector<8x64xf32>
    %119 = arith.addf %117, %118 : vector<8x64xf32>
    %120 = arith.mulf %119, %112 : vector<8x64xf32>
    %cst_64 = arith.constant -0.284496725 : f32
    %121 = vector.broadcast %cst_64 : f32 to vector<8x64xf32>
    %122 = arith.addf %120, %121 : vector<8x64xf32>
    %123 = arith.mulf %122, %112 : vector<8x64xf32>
    %cst_65 = arith.constant 0.254829586 : f32
    %124 = vector.broadcast %cst_65 : f32 to vector<8x64xf32>
    %125 = arith.addf %123, %124 : vector<8x64xf32>
    %126 = arith.mulf %125, %112 : vector<8x64xf32>
    %cst_66 = arith.constant 0.000000e+00 : f32
    %127 = vector.broadcast %cst_66 : f32 to vector<8x64xf32>
    %128 = arith.subf %127, %106 : vector<8x64xf32>
    %129 = arith.mulf %128, %106 : vector<8x64xf32>
    %130 = math.exp %129 : vector<8x64xf32>
    %131 = arith.mulf %126, %130 : vector<8x64xf32>
    %cst_67 = arith.constant 1.000000e+00 : f32
    %132 = vector.broadcast %cst_67 : f32 to vector<8x64xf32>
    %133 = arith.subf %132, %131 : vector<8x64xf32>
    %134 = arith.mulf %105, %133 : vector<8x64xf32>
    %cst_68 = arith.constant 1.000000e+00 : f32
    %135 = vector.broadcast %cst_68 : f32 to vector<8x64xf32>
    %136 = arith.addf %135, %134 : vector<8x64xf32>
    %137 = arith.mulf %98, %136 : vector<8x64xf32>
    %cst_69 = arith.constant dense<0.000000e+00> : vector<8x32xf32>
    %138 = tpu.matmul %137, %18, %cst_69 {dimension_numbers = #tpu.dot_dimension_numbers<[1], [0], [0], [1], [0, 0, 1, 1], [], []>} : vector<8x64xf32>, vector<64x32xf32>, vector<8x32xf32> -> vector<8x32xf32>
    %139 = vector.broadcast %20 : vector<1x32xf32> to vector<8x32xf32>
    %140 = arith.addf %138, %139 : vector<8x32xf32>
    %141 = arith.addf %93, %140 : vector<8x32xf32>
    %cst_70 = arith.constant dense<0.000000e+00> : vector<8xf32>
    %142 = vector.multi_reduction <add>, %141, %cst_70 [1] : vector<8x32xf32> to vector<8xf32>
    %143 = vector.shape_cast %142 : vector<8xf32> to vector<8x1xf32>
    %cst_71 = arith.constant 3.200000e+01 : f32
    %144 = vector.broadcast %cst_71 : f32 to vector<8x1xf32>
    %145 = arith.divf %143, %144 : vector<8x1xf32>
    %146 = vector.broadcast %145 : vector<8x1xf32> to vector<8x32xf32>
    %147 = arith.subf %141, %146 : vector<8x32xf32>
    %148 = arith.mulf %147, %147 : vector<8x32xf32>
    %cst_72 = arith.constant dense<0.000000e+00> : vector<8xf32>
    %149 = vector.multi_reduction <add>, %148, %cst_72 [1] : vector<8x32xf32> to vector<8xf32>
    %150 = vector.shape_cast %149 : vector<8xf32> to vector<8x1xf32>
    %cst_73 = arith.constant 3.200000e+01 : f32
    %151 = vector.broadcast %cst_73 : f32 to vector<8x1xf32>
    %152 = arith.divf %150, %151 : vector<8x1xf32>
    %153 = vector.broadcast %145 : vector<8x1xf32> to vector<8x32xf32>
    %154 = arith.subf %141, %153 : vector<8x32xf32>
    %cst_74 = arith.constant 9.99999974E-6 : f32
    %155 = vector.broadcast %cst_74 : f32 to vector<8x1xf32>
    %156 = arith.addf %152, %155 : vector<8x1xf32>
    %157 = math.rsqrt %156 : vector<8x1xf32>
    %158 = vector.broadcast %157 : vector<8x1xf32> to vector<8x32xf32>
    %159 = arith.mulf %154, %158 : vector<8x32xf32>
    %160 = vector.broadcast %26 : vector<1x32xf32> to vector<8x32xf32>
    %161 = arith.mulf %159, %160 : vector<8x32xf32>
    %162 = vector.broadcast %28 : vector<1x32xf32> to vector<8x32xf32>
    %163 = arith.addf %161, %162 : vector<8x32xf32>
    %c1 = arith.constant 1 : index
    %c0_75 = arith.constant 0 : index
    %c0_76 = arith.constant 0 : index
    %164 = vector.load %arg4[%c1, %c0_75, %c0_76] : memref<2x32x96xf32, #tpu.memory_space<vmem>>, vector<1x32x96xf32>
    %165 = vector.shape_cast %164 : vector<1x32x96xf32> to vector<32x96xf32>
    %c1_77 = arith.constant 1 : index
    %c0_78 = arith.constant 0 : index
    %c0_79 = arith.constant 0 : index
    %166 = vector.load %arg5[%c1_77, %c0_78, %c0_79] : memref<2x1x96xf32, #tpu.memory_space<vmem>>, vector<1x1x96xf32>
    %167 = vector.shape_cast %166 : vector<1x1x96xf32> to vector<1x96xf32>
    %c1_80 = arith.constant 1 : index
    %c0_81 = arith.constant 0 : index
    %c0_82 = arith.constant 0 : index
    %168 = vector.load %arg6[%c1_80, %c0_81, %c0_82] : memref<2x32x32xf32, #tpu.memory_space<vmem>>, vector<1x32x32xf32>
    %169 = vector.shape_cast %168 : vector<1x32x32xf32> to vector<32x32xf32>
    %c1_83 = arith.constant 1 : index
    %c0_84 = arith.constant 0 : index
    %c0_85 = arith.constant 0 : index
    %170 = vector.load %arg7[%c1_83, %c0_84, %c0_85] : memref<2x1x32xf32, #tpu.memory_space<vmem>>, vector<1x1x32xf32>
    %171 = vector.shape_cast %170 : vector<1x1x32xf32> to vector<1x32xf32>
    %c1_86 = arith.constant 1 : index
    %c0_87 = arith.constant 0 : index
    %c0_88 = arith.constant 0 : index
    %172 = vector.load %arg8[%c1_86, %c0_87, %c0_88] : memref<2x32x64xf32, #tpu.memory_space<vmem>>, vector<1x32x64xf32>
    %173 = vector.shape_cast %172 : vector<1x32x64xf32> to vector<32x64xf32>
    %c1_89 = arith.constant 1 : index
    %c0_90 = arith.constant 0 : index
    %c0_91 = arith.constant 0 : index
    %174 = vector.load %arg9[%c1_89, %c0_90, %c0_91] : memref<2x1x64xf32, #tpu.memory_space<vmem>>, vector<1x1x64xf32>
    %175 = vector.shape_cast %174 : vector<1x1x64xf32> to vector<1x64xf32>
    %c1_92 = arith.constant 1 : index
    %c0_93 = arith.constant 0 : index
    %c0_94 = arith.constant 0 : index
    %176 = vector.load %arg10[%c1_92, %c0_93, %c0_94] : memref<2x64x32xf32, #tpu.memory_space<vmem>>, vector<1x64x32xf32>
    %177 = vector.shape_cast %176 : vector<1x64x32xf32> to vector<64x32xf32>
    %c1_95 = arith.constant 1 : index
    %c0_96 = arith.constant 0 : index
    %c0_97 = arith.constant 0 : index
    %178 = vector.load %arg11[%c1_95, %c0_96, %c0_97] : memref<2x1x32xf32, #tpu.memory_space<vmem>>, vector<1x1x32xf32>
    %179 = vector.shape_cast %178 : vector<1x1x32xf32> to vector<1x32xf32>
    %c1_98 = arith.constant 1 : index
    %c0_99 = arith.constant 0 : index
    %c0_100 = arith.constant 0 : index
    %180 = vector.load %arg12[%c1_98, %c0_99, %c0_100] : memref<2x1x32xf32, #tpu.memory_space<vmem>>, vector<1x1x32xf32>
    %181 = vector.shape_cast %180 : vector<1x1x32xf32> to vector<1x32xf32>
    %c1_101 = arith.constant 1 : index
    %c0_102 = arith.constant 0 : index
    %c0_103 = arith.constant 0 : index
    %182 = vector.load %arg13[%c1_101, %c0_102, %c0_103] : memref<2x1x32xf32, #tpu.memory_space<vmem>>, vector<1x1x32xf32>
    %183 = vector.shape_cast %182 : vector<1x1x32xf32> to vector<1x32xf32>
    %c1_104 = arith.constant 1 : index
    %c0_105 = arith.constant 0 : index
    %c0_106 = arith.constant 0 : index
    %184 = vector.load %arg14[%c1_104, %c0_105, %c0_106] : memref<2x1x32xf32, #tpu.memory_space<vmem>>, vector<1x1x32xf32>
    %185 = vector.shape_cast %184 : vector<1x1x32xf32> to vector<1x32xf32>
    %c1_107 = arith.constant 1 : index
    %c0_108 = arith.constant 0 : index
    %c0_109 = arith.constant 0 : index
    %186 = vector.load %arg15[%c1_107, %c0_108, %c0_109] : memref<2x1x32xf32, #tpu.memory_space<vmem>>, vector<1x1x32xf32>
    %187 = vector.shape_cast %186 : vector<1x1x32xf32> to vector<1x32xf32>
    %cst_110 = arith.constant dense<0.000000e+00> : vector<8x96xf32>
    %188 = tpu.matmul %163, %165, %cst_110 {dimension_numbers = #tpu.dot_dimension_numbers<[1], [0], [0], [1], [0, 0, 1, 1], [], []>} : vector<8x32xf32>, vector<32x96xf32>, vector<8x96xf32> -> vector<8x96xf32>
    %189 = vector.broadcast %167 : vector<1x96xf32> to vector<8x96xf32>
    %190 = arith.addf %188, %189 : vector<8x96xf32>
    %191 = vector.extract_strided_slice %190 {offsets = [0, 0], sizes = [8, 32], strides = [1, 1]} : vector<8x96xf32> to vector<8x32xf32>
    %192 = vector.extract_strided_slice %190 {offsets = [0, 32], sizes = [8, 32], strides = [1, 1]} : vector<8x96xf32> to vector<8x32xf32>
    %193 = vector.extract_strided_slice %190 {offsets = [0, 64], sizes = [8, 32], strides = [1, 1]} : vector<8x96xf32> to vector<8x32xf32>
    %194 = vector.extract_strided_slice %191 {offsets = [0, 0], sizes = [8, 8], strides = [1, 1]} : vector<8x32xf32> to vector<8x8xf32>
    %195 = vector.extract_strided_slice %191 {offsets = [0, 8], sizes = [8, 8], strides = [1, 1]} : vector<8x32xf32> to vector<8x8xf32>
    %196 = vector.extract_strided_slice %191 {offsets = [0, 16], sizes = [8, 8], strides = [1, 1]} : vector<8x32xf32> to vector<8x8xf32>
    %197 = vector.extract_strided_slice %191 {offsets = [0, 24], sizes = [8, 8], strides = [1, 1]} : vector<8x32xf32> to vector<8x8xf32>
    %198 = tpu.concatenate %194, %195, %196, %197 in 0 : vector<8x8xf32>, vector<8x8xf32>, vector<8x8xf32>, vector<8x8xf32> -> vector<32x8xf32>
    %199 = vector.extract_strided_slice %192 {offsets = [0, 0], sizes = [8, 8], strides = [1, 1]} : vector<8x32xf32> to vector<8x8xf32>
    %200 = vector.extract_strided_slice %192 {offsets = [0, 8], sizes = [8, 8], strides = [1, 1]} : vector<8x32xf32> to vector<8x8xf32>
    %201 = vector.extract_strided_slice %192 {offsets = [0, 16], sizes = [8, 8], strides = [1, 1]} : vector<8x32xf32> to vector<8x8xf32>
    %202 = vector.extract_strided_slice %192 {offsets = [0, 24], sizes = [8, 8], strides = [1, 1]} : vector<8x32xf32> to vector<8x8xf32>
    %203 = tpu.concatenate %199, %200, %201, %202 in 0 : vector<8x8xf32>, vector<8x8xf32>, vector<8x8xf32>, vector<8x8xf32> -> vector<32x8xf32>
    %204 = vector.extract_strided_slice %193 {offsets = [0, 0], sizes = [8, 8], strides = [1, 1]} : vector<8x32xf32> to vector<8x8xf32>
    %205 = vector.extract_strided_slice %193 {offsets = [0, 8], sizes = [8, 8], strides = [1, 1]} : vector<8x32xf32> to vector<8x8xf32>
    %206 = vector.extract_strided_slice %193 {offsets = [0, 16], sizes = [8, 8], strides = [1, 1]} : vector<8x32xf32> to vector<8x8xf32>
    %207 = vector.extract_strided_slice %193 {offsets = [0, 24], sizes = [8, 8], strides = [1, 1]} : vector<8x32xf32> to vector<8x8xf32>
    %208 = tpu.concatenate %204, %205, %206, %207 in 0 : vector<8x8xf32>, vector<8x8xf32>, vector<8x8xf32>, vector<8x8xf32> -> vector<32x8xf32>
    %cst_111 = arith.constant dense<0.000000e+00> : vector<32x32xf32>
    %209 = tpu.matmul %198, %203, %cst_111 {dimension_numbers = #tpu.dot_dimension_numbers<[1], [1], [0], [0], [0, 0, 1, 0], [], []>} : vector<32x8xf32>, vector<32x8xf32>, vector<32x32xf32> -> vector<32x32xf32>
    %210 = arith.addf %209, %4 : vector<32x32xf32>
    %cst_112 = arith.constant dense<0xFF800000> : vector<32xf32>
    %211 = vector.multi_reduction <maximumf>, %210, %cst_112 [1] : vector<32x32xf32> to vector<32xf32>
    %212 = vector.shape_cast %211 : vector<32xf32> to vector<32x1xf32>
    %213 = vector.broadcast %212 : vector<32x1xf32> to vector<32x32xf32>
    %214 = arith.subf %210, %213 : vector<32x32xf32>
    %215 = math.exp %214 : vector<32x32xf32>
    %cst_113 = arith.constant dense<0.000000e+00> : vector<32xf32>
    %216 = vector.multi_reduction <add>, %215, %cst_113 [1] : vector<32x32xf32> to vector<32xf32>
    %217 = vector.shape_cast %216 : vector<32xf32> to vector<32x1xf32>
    %218 = tpu.reciprocal %217 {approx = true} : vector<32x1xf32> -> vector<32x1xf32>
    %219 = vector.broadcast %218 : vector<32x1xf32> to vector<32x32xf32>
    %220 = arith.mulf %215, %219 : vector<32x32xf32>
    %cst_114 = arith.constant dense<0.000000e+00> : vector<32x8xf32>
    %221 = tpu.matmul %220, %208, %cst_114 {dimension_numbers = #tpu.dot_dimension_numbers<[1], [0], [0], [1], [0, 0, 1, 1], [], []>} : vector<32x32xf32>, vector<32x8xf32>, vector<32x8xf32> -> vector<32x8xf32>
    %222 = vector.extract_strided_slice %221 {offsets = [0, 0], sizes = [8, 8], strides = [1, 1]} : vector<32x8xf32> to vector<8x8xf32>
    %223 = vector.extract_strided_slice %221 {offsets = [8, 0], sizes = [8, 8], strides = [1, 1]} : vector<32x8xf32> to vector<8x8xf32>
    %224 = vector.extract_strided_slice %221 {offsets = [16, 0], sizes = [8, 8], strides = [1, 1]} : vector<32x8xf32> to vector<8x8xf32>
    %225 = vector.extract_strided_slice %221 {offsets = [24, 0], sizes = [8, 8], strides = [1, 1]} : vector<32x8xf32> to vector<8x8xf32>
    %226 = tpu.concatenate %222, %223, %224, %225 in 1 : vector<8x8xf32>, vector<8x8xf32>, vector<8x8xf32>, vector<8x8xf32> -> vector<8x32xf32>
    %cst_115 = arith.constant dense<0.000000e+00> : vector<8x32xf32>
    %227 = tpu.matmul %226, %169, %cst_115 {dimension_numbers = #tpu.dot_dimension_numbers<[1], [0], [0], [1], [0, 0, 1, 1], [], []>} : vector<8x32xf32>, vector<32x32xf32>, vector<8x32xf32> -> vector<8x32xf32>
    %228 = vector.broadcast %171 : vector<1x32xf32> to vector<8x32xf32>
    %229 = arith.addf %227, %228 : vector<8x32xf32>
    %230 = arith.addf %163, %229 : vector<8x32xf32>
    %cst_116 = arith.constant dense<0.000000e+00> : vector<8xf32>
    %231 = vector.multi_reduction <add>, %230, %cst_116 [1] : vector<8x32xf32> to vector<8xf32>
    %232 = vector.shape_cast %231 : vector<8xf32> to vector<8x1xf32>
    %cst_117 = arith.constant 3.200000e+01 : f32
    %233 = vector.broadcast %cst_117 : f32 to vector<8x1xf32>
    %234 = arith.divf %232, %233 : vector<8x1xf32>
    %235 = vector.broadcast %234 : vector<8x1xf32> to vector<8x32xf32>
    %236 = arith.subf %230, %235 : vector<8x32xf32>
    %237 = arith.mulf %236, %236 : vector<8x32xf32>
    %cst_118 = arith.constant dense<0.000000e+00> : vector<8xf32>
    %238 = vector.multi_reduction <add>, %237, %cst_118 [1] : vector<8x32xf32> to vector<8xf32>
    %239 = vector.shape_cast %238 : vector<8xf32> to vector<8x1xf32>
    %cst_119 = arith.constant 3.200000e+01 : f32
    %240 = vector.broadcast %cst_119 : f32 to vector<8x1xf32>
    %241 = arith.divf %239, %240 : vector<8x1xf32>
    %242 = vector.broadcast %234 : vector<8x1xf32> to vector<8x32xf32>
    %243 = arith.subf %230, %242 : vector<8x32xf32>
    %cst_120 = arith.constant 9.99999974E-6 : f32
    %244 = vector.broadcast %cst_120 : f32 to vector<8x1xf32>
    %245 = arith.addf %241, %244 : vector<8x1xf32>
    %246 = math.rsqrt %245 : vector<8x1xf32>
    %247 = vector.broadcast %246 : vector<8x1xf32> to vector<8x32xf32>
    %248 = arith.mulf %243, %247 : vector<8x32xf32>
    %249 = vector.broadcast %181 : vector<1x32xf32> to vector<8x32xf32>
    %250 = arith.mulf %248, %249 : vector<8x32xf32>
    %251 = vector.broadcast %183 : vector<1x32xf32> to vector<8x32xf32>
    %252 = arith.addf %250, %251 : vector<8x32xf32>
    %cst_121 = arith.constant dense<0.000000e+00> : vector<8x64xf32>
    %253 = tpu.matmul %252, %173, %cst_121 {dimension_numbers = #tpu.dot_dimension_numbers<[1], [0], [0], [1], [0, 0, 1, 1], [], []>} : vector<8x32xf32>, vector<32x64xf32>, vector<8x64xf32> -> vector<8x64xf32>
    %254 = vector.broadcast %175 : vector<1x64xf32> to vector<8x64xf32>
    %255 = arith.addf %253, %254 : vector<8x64xf32>
    %cst_122 = arith.constant 5.000000e-01 : f32
    %256 = vector.broadcast %cst_122 : f32 to vector<8x64xf32>
    %257 = arith.mulf %256, %255 : vector<8x64xf32>
    %cst_123 = arith.constant 0.707106769 : f32
    %258 = vector.broadcast %cst_123 : f32 to vector<8x64xf32>
    %259 = arith.mulf %255, %258 : vector<8x64xf32>
    %cst_124 = arith.constant 0.000000e+00 : f32
    %260 = vector.broadcast %cst_124 : f32 to vector<8x64xf32>
    %261 = arith.cmpf oge, %259, %260 : vector<8x64xf32>
    %cst_125 = arith.constant 1.000000e+00 : f32
    %cst_126 = arith.constant -1.000000e+00 : f32
    %262 = vector.broadcast %cst_125 : f32 to vector<8x64xf32>
    %263 = vector.broadcast %cst_126 : f32 to vector<8x64xf32>
    %264 = arith.select %261, %262, %263 : vector<8x64xi1>, vector<8x64xf32>
    %265 = math.absf %259 : vector<8x64xf32>
    %cst_127 = arith.constant 0.327591091 : f32
    %266 = vector.broadcast %cst_127 : f32 to vector<8x64xf32>
    %267 = arith.mulf %266, %265 : vector<8x64xf32>
    %cst_128 = arith.constant 1.000000e+00 : f32
    %268 = vector.broadcast %cst_128 : f32 to vector<8x64xf32>
    %269 = arith.addf %268, %267 : vector<8x64xf32>
    %cst_129 = arith.constant 1.000000e+00 : f32
    %270 = vector.broadcast %cst_129 : f32 to vector<8x64xf32>
    %271 = arith.divf %270, %269 : vector<8x64xf32>
    %cst_130 = arith.constant 1.06140542 : f32
    %272 = vector.broadcast %cst_130 : f32 to vector<8x64xf32>
    %273 = arith.mulf %272, %271 : vector<8x64xf32>
    %cst_131 = arith.constant -1.45315206 : f32
    %274 = vector.broadcast %cst_131 : f32 to vector<8x64xf32>
    %275 = arith.addf %273, %274 : vector<8x64xf32>
    %276 = arith.mulf %275, %271 : vector<8x64xf32>
    %cst_132 = arith.constant 1.42141378 : f32
    %277 = vector.broadcast %cst_132 : f32 to vector<8x64xf32>
    %278 = arith.addf %276, %277 : vector<8x64xf32>
    %279 = arith.mulf %278, %271 : vector<8x64xf32>
    %cst_133 = arith.constant -0.284496725 : f32
    %280 = vector.broadcast %cst_133 : f32 to vector<8x64xf32>
    %281 = arith.addf %279, %280 : vector<8x64xf32>
    %282 = arith.mulf %281, %271 : vector<8x64xf32>
    %cst_134 = arith.constant 0.254829586 : f32
    %283 = vector.broadcast %cst_134 : f32 to vector<8x64xf32>
    %284 = arith.addf %282, %283 : vector<8x64xf32>
    %285 = arith.mulf %284, %271 : vector<8x64xf32>
    %cst_135 = arith.constant 0.000000e+00 : f32
    %286 = vector.broadcast %cst_135 : f32 to vector<8x64xf32>
    %287 = arith.subf %286, %265 : vector<8x64xf32>
    %288 = arith.mulf %287, %265 : vector<8x64xf32>
    %289 = math.exp %288 : vector<8x64xf32>
    %290 = arith.mulf %285, %289 : vector<8x64xf32>
    %cst_136 = arith.constant 1.000000e+00 : f32
    %291 = vector.broadcast %cst_136 : f32 to vector<8x64xf32>
    %292 = arith.subf %291, %290 : vector<8x64xf32>
    %293 = arith.mulf %264, %292 : vector<8x64xf32>
    %cst_137 = arith.constant 1.000000e+00 : f32
    %294 = vector.broadcast %cst_137 : f32 to vector<8x64xf32>
    %295 = arith.addf %294, %293 : vector<8x64xf32>
    %296 = arith.mulf %257, %295 : vector<8x64xf32>
    %cst_138 = arith.constant dense<0.000000e+00> : vector<8x32xf32>
    %297 = tpu.matmul %296, %177, %cst_138 {dimension_numbers = #tpu.dot_dimension_numbers<[1], [0], [0], [1], [0, 0, 1, 1], [], []>} : vector<8x64xf32>, vector<64x32xf32>, vector<8x32xf32> -> vector<8x32xf32>
    %298 = vector.broadcast %179 : vector<1x32xf32> to vector<8x32xf32>
    %299 = arith.addf %297, %298 : vector<8x32xf32>
    %300 = arith.addf %252, %299 : vector<8x32xf32>
    %cst_139 = arith.constant dense<0.000000e+00> : vector<8xf32>
    %301 = vector.multi_reduction <add>, %300, %cst_139 [1] : vector<8x32xf32> to vector<8xf32>
    %302 = vector.shape_cast %301 : vector<8xf32> to vector<8x1xf32>
    %cst_140 = arith.constant 3.200000e+01 : f32
    %303 = vector.broadcast %cst_140 : f32 to vector<8x1xf32>
    %304 = arith.divf %302, %303 : vector<8x1xf32>
    %305 = vector.broadcast %304 : vector<8x1xf32> to vector<8x32xf32>
    %306 = arith.subf %300, %305 : vector<8x32xf32>
    %307 = arith.mulf %306, %306 : vector<8x32xf32>
    %cst_141 = arith.constant dense<0.000000e+00> : vector<8xf32>
    %308 = vector.multi_reduction <add>, %307, %cst_141 [1] : vector<8x32xf32> to vector<8xf32>
    %309 = vector.shape_cast %308 : vector<8xf32> to vector<8x1xf32>
    %cst_142 = arith.constant 3.200000e+01 : f32
    %310 = vector.broadcast %cst_142 : f32 to vector<8x1xf32>
    %311 = arith.divf %309, %310 : vector<8x1xf32>
    %312 = vector.broadcast %304 : vector<8x1xf32> to vector<8x32xf32>
    %313 = arith.subf %300, %312 : vector<8x32xf32>
    %cst_143 = arith.constant 9.99999974E-6 : f32
    %314 = vector.broadcast %cst_143 : f32 to vector<8x1xf32>
    %315 = arith.addf %311, %314 : vector<8x1xf32>
    %316 = math.rsqrt %315 : vector<8x1xf32>
    %317 = vector.broadcast %316 : vector<8x1xf32> to vector<8x32xf32>
    %318 = arith.mulf %313, %317 : vector<8x32xf32>
    %319 = vector.broadcast %185 : vector<1x32xf32> to vector<8x32xf32>
    %320 = arith.mulf %318, %319 : vector<8x32xf32>
    %321 = vector.broadcast %187 : vector<1x32xf32> to vector<8x32xf32>
    %322 = arith.addf %320, %321 : vector<8x32xf32>
    %c0_144 = arith.constant 0 : index
    %c0_145 = arith.constant 0 : index
    %c0_146 = arith.constant 0 : index
    %323 = vector.load %arg16[%c0_144, %c0_145, %c0_146] : memref<1x8x32xf32, #tpu.memory_space<vmem>>, vector<1x8x32xf32>
    %324 = vector.shape_cast %323 : vector<1x8x32xf32> to vector<8x32xf32>
    %325 = vector.shape_cast %322 : vector<8x32xf32> to vector<1x8x32xf32>
    tpu.vector_store %arg16[%c0_144, %c0_145, %c0_146], %325 {strides = array<i32>} : memref<1x8x32xf32, #tpu.memory_space<vmem>>, vector<1x8x32xf32>,
    return
  }
  func.func @transform_0(%arg0: i32) -> (i32, i32, i32) {
    %c0_i32 = arith.constant 0 : i32
    %c0_i32_0 = arith.constant 0 : i32
    %c0_i32_1 = arith.constant 0 : i32
    return %arg0, %c0_i32, %c0_i32_0 : i32, i32, i32
  }
  func.func @transform_1(%arg0: i32) -> (i32, i32) {
    %c0_i32 = arith.constant 0 : i32
    %c0_i32_0 = arith.constant 0 : i32
    %c0_i32_1 = arith.constant 0 : i32
    return %c0_i32, %c0_i32_0 : i32, i32
  }
  func.func @transform_2(%arg0: i32) -> (i32, i32) {
    %c0_i32 = arith.constant 0 : i32
    %c0_i32_0 = arith.constant 0 : i32
    %c0_i32_1 = arith.constant 0 : i32
    return %c0_i32, %c0_i32_0 : i32, i32
  }
  func.func @transform_3(%arg0: i32) -> (i32, i32, i32) {
    %c0_i32 = arith.constant 0 : i32
    %c0_i32_0 = arith.constant 0 : i32
    %c0_i32_1 = arith.constant 0 : i32
    %c0_i32_2 = arith.constant 0 : i32
    return %c0_i32, %c0_i32_0, %c0_i32_1 : i32, i32, i32
  }
  func.func @transform_4(%arg0: i32) -> (i32, i32, i32) {
    %c0_i32 = arith.constant 0 : i32
    %c0_i32_0 = arith.constant 0 : i32
    %c0_i32_1 = arith.constant 0 : i32
    %c0_i32_2 = arith.constant 0 : i32
    return %c0_i32, %c0_i32_0, %c0_i32_1 : i32, i32, i32
  }
  func.func @transform_5(%arg0: i32) -> (i32, i32, i32) {
    %c0_i32 = arith.constant 0 : i32
    %c0_i32_0 = arith.constant 0 : i32
    %c0_i32_1 = arith.constant 0 : i32
    %c0_i32_2 = arith.constant 0 : i32
    return %c0_i32, %c0_i32_0, %c0_i32_1 : i32, i32, i32
  }
  func.func @transform_6(%arg0: i32) -> (i32, i32, i32) {
    %c0_i32 = arith.constant 0 : i32
    %c0_i32_0 = arith.constant 0 : i32
    %c0_i32_1 = arith.constant 0 : i32
    %c0_i32_2 = arith.constant 0 : i32
    return %c0_i32, %c0_i32_0, %c0_i32_1 : i32, i32, i32
  }
  func.func @transform_7(%arg0: i32) -> (i32, i32, i32) {
    %c0_i32 = arith.constant 0 : i32
    %c0_i32_0 = arith.constant 0 : i32
    %c0_i32_1 = arith.constant 0 : i32
    %c0_i32_2 = arith.constant 0 : i32
    return %c0_i32, %c0_i32_0, %c0_i32_1 : i32, i32, i32
  }
  func.func @transform_8(%arg0: i32) -> (i32, i32, i32) {
    %c0_i32 = arith.constant 0 : i32
    %c0_i32_0 = arith.constant 0 : i32
    %c0_i32_1 = arith.constant 0 : i32
    %c0_i32_2 = arith.constant 0 : i32
    return %c0_i32, %c0_i32_0, %c0_i32_1 : i32, i32, i32
  }
  func.func @transform_9(%arg0: i32) -> (i32, i32, i32) {
    %c0_i32 = arith.constant 0 : i32
    %c0_i32_0 = arith.constant 0 : i32
    %c0_i32_1 = arith.constant 0 : i32
    %c0_i32_2 = arith.constant 0 : i32
    return %c0_i32, %c0_i32_0, %c0_i32_1 : i32, i32, i32
  }
  func.func @transform_10(%arg0: i32) -> (i32, i32, i32) {
    %c0_i32 = arith.constant 0 : i32
    %c0_i32_0 = arith.constant 0 : i32
    %c0_i32_1 = arith.constant 0 : i32
    %c0_i32_2 = arith.constant 0 : i32
    return %c0_i32, %c0_i32_0, %c0_i32_1 : i32, i32, i32
  }
  func.func @transform_11(%arg0: i32) -> (i32, i32, i32) {
    %c0_i32 = arith.constant 0 : i32
    %c0_i32_0 = arith.constant 0 : i32
    %c0_i32_1 = arith.constant 0 : i32
    %c0_i32_2 = arith.constant 0 : i32
    return %c0_i32, %c0_i32_0, %c0_i32_1 : i32, i32, i32
  }
  func.func @transform_12(%arg0: i32) -> (i32, i32, i32) {
    %c0_i32 = arith.constant 0 : i32
    %c0_i32_0 = arith.constant 0 : i32
    %c0_i32_1 = arith.constant 0 : i32
    %c0_i32_2 = arith.constant 0 : i32
    return %c0_i32, %c0_i32_0, %c0_i32_1 : i32, i32, i32
  }
  func.func @transform_13(%arg0: i32) -> (i32, i32, i32) {
    %c0_i32 = arith.constant 0 : i32
    %c0_i32_0 = arith.constant 0 : i32
    %c0_i32_1 = arith.constant 0 : i32
    %c0_i32_2 = arith.constant 0 : i32
    return %c0_i32, %c0_i32_0, %c0_i32_1 : i32, i32, i32
  }
  func.func @transform_14(%arg0: i32) -> (i32, i32, i32) {
    %c0_i32 = arith.constant 0 : i32
    %c0_i32_0 = arith.constant 0 : i32
    %c0_i32_1 = arith.constant 0 : i32
    %c0_i32_2 = arith.constant 0 : i32
    return %c0_i32, %c0_i32_0, %c0_i32_1 : i32, i32, i32
  }
  func.func @transform_15(%arg0: i32) -> (i32, i32, i32) {
    %c0_i32 = arith.constant 0 : i32
    %c0_i32_0 = arith.constant 0 : i32
    %c0_i32_1 = arith.constant 0 : i32
    return %arg0, %c0_i32, %c0_i32_0 : i32, i32, i32
  }
}

</mosaic_0001>

<bundles_post_ra>
// kernel: tpu_custom_call.1
= control target key start
LH: loop header
LB: loop body
LE: loop exit
PB: predicated region body
PF: predicated region fallthrough
CT: control target
= control target key end

     0   :  { %s2661_s0 = inlined_call_operand.hbm [shape: f32[2,8,32], index: 0, kind: input, shape index: {}]   ;;  %s2662_s1 = inlined_call_operand.hbm [shape: f32[8,32], index: 1, kind: input, shape index: {}]   ;;  %s2663_s2 = inlined_call_operand.hbm [shape: f32[32,32], index: 2, kind: input, shape index: {}]   ;;  %s2664_s3 = inlined_call_operand.vmem [shape: f32[2,32,96], index: 3, kind: input, shape index: {}]   ;;  %s2665_s4 = inlined_call_operand.vmem [shape: f32[2,1,96], index: 4, kind: input, shape index: {}]   ;;  %s2666_s5 = inlined_call_operand.vmem [shape: f32[2,32,32], index: 5, kind: input, shape index: {}]   ;;  %s2667_s6 = inlined_call_operand.vmem [shape: f32[2,1,32], index: 6, kind: input, shape index: {}]   ;;  %s2668_s7 = inlined_call_operand.vmem [shape: f32[2,32,64], index: 7, kind: input, shape index: {}]   ;;  %s2669_s8 = inlined_call_operand.hbm [shape: f32[2,1,64], index: 8, kind: input, shape index: {}]   ;;  %s2670_s9 = inlined_call_operand.vmem [shape: f32[2,64,32], index: 9, kind: input, shape index: {}]   ;;  %s2671_s10 = inlined_call_operand.vmem [shape: f32[2,1,32], index: 10, kind: input, shape index: {}]   ;;  %s2672_s11 = inlined_call_operand.vmem [shape: f32[2,1,32], index: 11, kind: input, shape index: {}]   ;;  %s2673_s12 = inlined_call_operand.vmem [shape: f32[2,1,32], index: 12, kind: input, shape index: {}]   ;;  %s2674_s13 = inlined_call_operand.hbm [shape: f32[2,1,32], index: 13, kind: input, shape index: {}]   ;;  %s2675_s14 = inlined_call_operand.hbm [shape: f32[2,1,32], index: 14, kind: input, shape index: {}]   ;;  %s2676_s15 = inlined_call_operand.hbm [shape: f32[2,8,32], index: 15, kind: output, shape index: {}]  }
   0x1   :  { %2689 = sst [smem:[#allocation19_spill]] %s2662_s1 }
   0x2   :  { %2690 = sst [smem:[#allocation20_spill]] %s2663_s2 }
   0x3   :  { %2691 = sst [smem:[#allocation21_spill]] %s2669_s8 }
   0x4   :  { %2692 = sst [smem:[#allocation22_spill]] %s2670_s9 }
   0x5   :  { %2693 = sst [smem:[#allocation23_spill]] %s2671_s10 }
   0x6   :  { %2694 = sst [smem:[#allocation24_spill]] %s2673_s12 }
   0x7   :  { %2695 = sst [smem:[#allocation25_spill]] %s2674_s13 }
   0x8   :  { %2696 = sst [smem:[#allocation26_spill]] %s2675_s14 }
   0x9   :  { %2697 = sst [smem:[#allocation27_spill]] %s2676_s15 }
   0xa   :  { %20 = vsyncpa [#allocation3], 0 }
   0xb   :  { %22 = vsyncpa [#allocation3 + $0x1], 0 }
   0xc   :  { %23 = vsyncpa [#allocation6], 0 }
   0xd   :  { %24 = vsyncpa [#allocation9], 0 }
   0xe   :  { %25 = vsyncpa [#allocation12], 0 }
   0xf   :  { %26 = vsyncpa [#allocation4], 0 }
  0x10   :  { %28 = vsyncpa [#allocation4 + $0x1], 0  ;;  %s2206_s18 = smov 0   ;;  %s2208_s19 = smov 0  }
  0x11   :  { %s2210_s20 = smov 0   ;;  %s2212_s21 = smov 0  }
  0x12 LB: > { %s2698_s1 = sld [smem:[#allocation19_spill]]  ;;  %s2230_s25 = sadd.s32 4294967295, %s2105_s21   ;;  %s2105_s21 = sphi %s2212_s21, %s2723_s21   ;;  %s2101_s20 = sphi %s2210_s20, %s2722_s20   ;;  %s2097_s19 = sphi %s2208_s19, %s2721_s19   ;;  %s2093_s18 = sphi %s2206_s18, %s2720_s18  }
  0x13   : > { %p1572_p0 = scmp.ge.s32.totalorder %s2105_s21, 1  ;;  %p55_p1 = scmp.eq.s32.totalorder %s2230_s25, 0 }
  0x14   : > { %p385_p2 = scmp.lt.s32.totalorder %s2105_s21, 3  ;;  %s2107_s27 = smov [#allocation5]  }
  0x15   : > { %s399_s28 = sshll.u32 %s2107_s27, 4  ;;  %s2700_s8 = sld [smem:[#allocation21_spill]]  ;;  %s400_s28 = int_to_ptr.vmem [resolvable:$true] %s399_s28 }
  0x16   : > { %p2235_p3 = pnand %p1572_p0, %p385_p2  ;;  %s2108_s22 = smov [#allocation8]  }
  0x17   : > { %s439_s23 = sshll.u32 %s2108_s22, 4  ;;  %s2109_s27 = smov 16   ;;  %s440_s23 = int_to_ptr.vmem [resolvable:$true] %s439_s23 }
  0x18   : > { %s397_s24 = sshll.u32 %s2698_s1, 4  ;;  %p1674_p5 = pneg %p2235_p3  ;;  %s398_s24 = int_to_ptr.hbm [resolvable:$true] %s397_s24 }
  0x19   : > { %s2110_s1 = smov 1   ;;  %s2702_s2 = sld [smem:[#allocation20_spill]] }
  0x1a   : > { %p2247_p6 = pnand %p1674_p5, %p55_p1  ;;  %s2111_s15 = smov [#allocation7]  }
  0x1b   : > { %s437_s16 = sshll.u32 %s2700_s8, 4  ;;  %s410_s10 = sshll.u32 %s2111_s15, 4  ;;  %s438_s16 = int_to_ptr.hbm [resolvable:$true] %s437_s16  ;;  %s411_s10 = int_to_ptr.vmem [resolvable:$true] %s410_s10 }
  0x1c   : > { %1677 = dma.hbm_to_vmem [thread:$0]  (!%p2247_p6), %s398_s24, 128, %s400_s28, [#allocation6]  }
  0x1d   : > { %1683 = dma.hbm_to_vmem [thread:$0]  (!%p2247_p6), %s438_s16, 32, %s440_s23, [#allocation9], %s2109_s27, %s2109_s27, %s2110_s1  }
  0x1e   : > { %s2703_s13 = sld [smem:[#allocation25_spill]]  ;;  %s2112_s24 = smov 128  }
  0x1f   : > { %s408_s8 = sshll.u32 %s2702_s2, 4  ;;  %s2113_s28 = smov 8   ;;  %s409_s8 = int_to_ptr.hbm [resolvable:$true] %s408_s8 }
  0x20   : > { %1680 = dma.hbm_to_vmem [thread:$0]  (!%p2247_p6), %s409_s8, 512, %s411_s10, [#allocation6], %s2112_s24, %s2112_s24, %s2113_s28  }
  0x21   : > { %s2114_s16 = smov [#allocation10]   ;;  %s2704_s14 = sld [smem:[#allocation26_spill]] }
  0x22   : > { %s465_s15 = sshll.u32 %s2114_s16, 4  ;;  %s2115_s8 = smov [#allocation11]   ;;  %s466_s15 = int_to_ptr.vmem [resolvable:$true] %s465_s15 }
  0x23   : > { %s479_s10 = sshll.u32 %s2115_s8, 4  ;;  %s1571_s12 = sadd.s32 4294967294, %s2105_s21   ;;  %s480_s10 = int_to_ptr.vmem [resolvable:$true] %s479_s10 }
  0x24   : > { %s463_s22 = sshll.u32 %s2703_s13, 4  ;;  %s2272_s30 = sadd.s32 1, %s2105_s21   ;;  %s464_s22 = int_to_ptr.hbm [resolvable:$true] %s463_s22 }
  0x25   : > { %1686 = dma.hbm_to_vmem [thread:$0]  (!%p2247_p6), %s464_s22, 32, %s466_s15, [#allocation9], %s2109_s27, %s2109_s27, %s2110_s1  }
  0x26   : > { %s41_s24 = sadd.s32 1, %s2101_s20  ;;  %s38_s28 = ssub.s32 %s2105_s21, %s2272_s30 }
  0x27   : > { %s477_s9 = sshll.u32 %s2704_s14, 4  ;;  %p48_p7 = scmp.ne.s32.totalorder %s2101_s20, %s2097_s19  ;;  %s478_s9 = int_to_ptr.hbm [resolvable:$true] %s477_s9 }
  0x28   : > { %1689 = dma.hbm_to_vmem [thread:$0]  (!%p2247_p6), %s478_s9, 32, %s480_s10, [#allocation12], %s2109_s27, %s2109_s27, %s2110_s1  }
  0x29   : > { %p39_p8 = scmp.eq.s32.totalorder %s38_s28, 0  ;;  %p49_p9 = scmp.eq.s32.totalorder %s2105_s21, 0 }
  0x2a   : > { %p54_p10 = scmp.ne.s32.totalorder %s2097_s19, %s2093_s18  ;;  %p372_p11 = scmp.eq.s32.totalorder %s2230_s25, 1 }
  0x2b   : > { %s2284_s22 = scalar_select %p39_p8, %s2101_s20, %s41_s24  }
  0x2c   : > { %p2288_p12 = por %p55_p1, %p54_p10  ;;  %p2292_p13 = por %p372_p11, %p48_p7 }
  0x2d   : > { %p378_p0 = scmp.eq.s32.totalorder %s1571_s12, 1  ;;  %p50_p2 = por %p49_p9, %p48_p7 }
  0x2e   : > { %s493_s27 = sand.u32 1, %s2101_s20   ;;  %p1703_p6 = scmp.lt.s32.totalorder %s2105_s21, 2 }
  0x2f   : > { %p2297_p5 = por %p378_p0, %p54_p10  ;;  %s1579_s15 = sshll.u32 %s493_s27, 3 }
  0x30   : > { %s1580_s23 = sshll.u32 %s2105_s21, 3  ;;  %s497_s24 = scalar_lea.vmem [#allocation2], %s1579_s15 }
  0x31   : > { %s501_s8 = scalar_lea.hbm %s2661_s0, %s1580_s23  ;;  %s505_s28 = sshll.u32 %s497_s24, 4  ;;  %s506_s28 = int_to_ptr.vmem [resolvable:$true] %s505_s28 }
  0x32   : > { %s503_s10 = sshll.u32 %s501_s8, 4  ;;  %p2306_p8 = pnand %p1703_p6, %p50_p2  ;;  %s504_s10 = int_to_ptr.hbm [resolvable:$true] %s503_s10 }
  0x33   : > { %s494_s2 = scalar_lea.sflag [#allocation3], %s493_s27  ;;  %s1997_s13 = sshra.s32 %s504_s10, 4  ;;  %s1998_s13 = int_to_ptr.hbm [resolvable:$true] %s1997_s13 }
  0x34   : > { %s1999_s14 = scalar_lea.hbm %s1998_s13, 8  ;;  %p2001_p9 = pneg %p2306_p8 }
  0x35   : > { %p2000_p7 = scmp.ne.s32.totalorder %s1998_s13, %s1999_s14  ;;  %s2004_s15 = scalar_lea.hbm %s2661_s0, 16 }
  0x36   : > { %p2005_p0 = scmp.lt.s32.totalorder %s1998_s13, %s2661_s0  ;;  %p2006_p2 = scmp.lt.s32.totalorder %s2004_s15, %s1999_s14 }
  0x37   : > { %p2002_p10 = pnand %p2001_p9, %p2000_p7 }
  0x38   : > { %p2007_p6 = por %p2006_p2, %p2005_p0 }
  0x39   : > { %p2003_p11 = pneg %p2002_p10 }
  0x3b   : > { %p2008_p4 = pnand %p2007_p6, %p2003_p11 }
  0x3d   : > { %2011 = shalt.err (!%p2008_p4)
}
  0x3e   : > { %1693 = dma.hbm_to_vmem [thread:$0]  (!%p2306_p8), %s504_s10, 128, %s506_s28, %s494_s2  }
  0x3f   : > { %514 = sbr.rel (%p2235_p3) target bundleno = 4114 (0x1012), region = 80  ;;  %s2323_s27 = sand.u32 (!%p2235_p3), 1, %s2097_s19  }
  0x40   : > { %s2681_s24 = sshll.u32 (!%p2235_p3), %s2323_s27, 3  ;;  %s517_s23 = scalar_lea.sflag (!%p2235_p3), [#allocation3], %s2323_s27 }
  0x41   : > { %s520_s13 = scalar_lea.vmem (!%p2235_p3), [#allocation2], %s2681_s24 }
  0x44   : > { %2072 = dma.done.wait (%p2288_p12), %s517_s23, 128  }
  0x45   : > { %2074 = vsyncadd (%p2288_p12), %s517_s23, 4294967168 }
  0x46   : > { %2076 = dma.done.wait (%p55_p1), [#allocation6], 640  }
  0x47   : > { %2078 = vsyncadd (%p55_p1), [#allocation6], 4294966656 }
  0x48   : > { %2080 = dma.done.wait (%p55_p1), [#allocation9], 64  }
  0x49   : > { %2082 = vsyncadd (%p55_p1), [#allocation9], 4294967232 }
  0x4a   : > { %2084 = dma.done.wait (%p55_p1), [#allocation12], 32  }
  0x4b   : > { %2086 = vsyncadd (%p55_p1), [#allocation12], 4294967264  ;;  %v603_v0 = vld [vmem:[%s2664_s3 + $0x18] sm:$0xff]  ;;  %v602_v1 = vld [vmem:[%s2664_s3 + $0x10] sm:$0xff]  ;;  %vm631_vm0 = vcmask 261120   ;;  %s2116_s8 = smov 120  }
  0x4c   : > { %647 = vmatpush.msra.mxu1 %v603_v0  ;;  %v601_v2 = vld [vmem:[%s2664_s3 + $0x8] sm:$0xff]  ;;  %v594_v4 = vld [vmem:[#allocation5] sm:$0xff]  ;;  %v600_v5 = vld [vmem:[%s2664_s3] sm:$0xff]  ;;  %s2117_s23 = smov 104   ;;  %s2687_s2 = smov 96   ;;  %vm670_vm1 = vcmask 64512  }
  0x4d   : > { %v593_v3 = vld [vmem:[%s520_s13] sm:$0xff]  ;;  %s2118_s13 = smov 112   ;;  %v2379_v17 = vld [vmem:[#allocation7] sm:$0xff]  ;;  %v2391_v29 = vld [vmem:[#allocation7 + $0x18] sm:$0xff]  ;;  %s2685_s14 = smov 64   ;;  %vm826_vm2 = vcmask 130048  }
  0x4e   : > { %648 = vmatpush.msra.mxu1 %v602_v1  ;;  %v2357_v6 = vadd.f32 %v594_v4, %v593_v3  ;;  %v1781_v7 = vld [vmem:[%s2665_s4] ss:$0 sm:$0xff]  ;;  %v2387_v25 = vld [vmem:[#allocation7 + $0x10] sm:$0xff]  ;;  %s2683_s26 = smov 8   ;;  %s2682_s17 = smov 16   ;;  %vm828_vm3 = vcmask 195584  }
  0x4f   : > { %v2383_v21 = vld [vmem:[#allocation7 + $0x8] sm:$0xff]  ;;  %s2684_s10 = smov 24   ;;  %s2709_s15 = sld [smem:[#allocation24_spill]]  ;;  %vm963_vm13 = vcmask 523264  }
  0x50   : > { %649 = vmatpush.msra.mxu1 %v601_v2  ;;  %s2710_s28 = sld [smem:[#allocation22_spill]]  ;;  %s2712_s12 = smov 96  }
  0x51   : > { %s2716_s29 = smov 24  }
  0x52   : > { %650 = vmatpush.msra.mxu1 %v600_v5 }
  0x53   : > { %1589 = vmatmul.msk.f32.vlgmr.msra.gmra.mxu1 %vm631_vm0, %v2357_v6 }
  0xd0   : > { %v652_v8 = vpop.f32.mrf.mxu1 }
  0xd1   : > { %v653_v9 = vadd.f32 %v1781_v7, %v652_v8 }
  0xd3   : > { %656 = vrot.lane.b32.xlu1 %v653_v9, %s2116_s8  ;;  %660 = vrot.lane.b32.xlu0 %v653_v9, %s2117_s23 }
  0xdb   : > { %658 = vrot.lane.b32.xlu0 %v653_v9, %s2118_s13 }
  0xe3   : > { %662 = vrot.lane.b32.xlu0 %v653_v9, %s2687_s2 }
 0x145   : > { %v661_v10 = vpop.permute.xlu0 %660  ;;  %v657_v12 = vpop.permute.xlu1 %656 }
 0x146   : > { %668 = vrot.lane.b32.xlu1 %v661_v10, %s2687_s2  ;;  %v1766_v33 = vpack.i.bf16 %v653_v9, %v657_v12 }
 0x14d   : > { %v659_v11 = vpop.permute.xlu0 %658 }
 0x14e   : > { %666 = vrot.lane.b32.xlu2 %v659_v11, %s2687_s2  ;;  %v1761_v34 = vpack.i.bf16 %v659_v11, %v661_v10 }
 0x155   : > { %v663_v16 = vpop.permute.xlu0 %662 }
 0x156   : > { %664 = vrot.lane.b32.xlu2 %v657_v12, %s2687_s2 }
 0x1a8   : > { %v667_v13 = vpop.permute.xlu2 %666 }
 0x1b0   : > { %v665_v15 = vpop.permute.xlu2 %664 }
 0x1b8   : > { %v669_v14 = vpop.permute.xlu1 %668 }
 0x1b9   : > { %1590 = vmatpush.xpose.msk.msrb.mxu1 %vm670_vm1, %v669_v14  ;;  %v608_v14 = vld [vmem:[%s2666_s5 + $0x18] sm:$0xff] }
 0x1ba   : > { %848 = vmatpush.msra.mxu3 %v608_v14  ;;  %v617_v14 = vld [vmem:[%s2710_s28 + $0x10] sm:$0xff] }
 0x1bd   : > { %1591 = vmatpush.xpose.msk.msrb.mxu1 %vm670_vm1, %v667_v13 }
 0x1c1   : > { %1592 = vmatpush.xpose.msk.msrb.mxu1 %vm670_vm1, %v665_v15  ;;  %v607_v15 = vld [vmem:[%s2666_s5 + $0x10] sm:$0xff] }
 0x1c2   : > { %849 = vmatpush.msra.mxu3 %v607_v15 }
 0x1c5   : > { %1593 = vmatpush.xpose.msk.msrb.mxu1 %vm670_vm1, %v663_v16  ;;  %v606_v16 = vld [vmem:[%s2666_s5 + $0x8] sm:$0xff] }
 0x1c6   : > { %850 = vmatpush.msra.mxu3 %v606_v16 }
 0x1c8   : > { %1594 = vmatmul.msk.f32.vlgmr.msrb.gmra.mxu1 %vm670_vm1, %v653_v9 }
 0x1d0   : > { %1595 = vmatmul.msk.f32.gmra.mxu1 %vm670_vm1, %v657_v12 }
 0x1d8   : > { %1596 = vmatmul.msk.f32.gmra.mxu1 %vm670_vm1, %v659_v11 }
 0x1e0   : > { %1597 = vmatmul.msk.f32.gmra.mxu1 %vm670_vm1, %v661_v10 }
 0x245   : > { %v704_v18 = vpop.f32.mrf.mxu1 }
 0x246   : > { %v705_v19 = vadd.f32 %v704_v18, %v2379_v17  ;;  %v605_v18 = vld [vmem:[%s2666_s5] sm:$0xff] }
 0x247   : > { %851 = vmatpush.msra.mxu3 %v605_v18  ;;  %v616_v18 = vld [vmem:[%s2710_s28 + $0x8] sm:$0xff] }
 0x248   : > { %v716_v20 = vsel %vm631_vm0, %v705_v19, -inf }
 0x249   : > { %717 = vmax.xlane.f32.xlu1 %v716_v20 }
 0x24d   : > { %v707_v22 = vpop.f32.mrf.mxu1 }
 0x24e   : > { %v708_v23 = vadd.f32 %v707_v22, %v2383_v21 }
 0x250   : > { %v719_v24 = vsel %vm631_vm0, %v708_v23, -inf }
 0x251   : > { %720 = vmax.xlane.f32.xlu2 %v719_v24 }
 0x255   : > { %v710_v26 = vpop.f32.mrf.mxu1 }
 0x256   : > { %v711_v27 = vadd.f32 %v710_v26, %v2387_v25 }
 0x258   : > { %v722_v28 = vsel %vm631_vm0, %v711_v27, -inf }
 0x259   : > { %723 = vmax.xlane.f32.xlu0 %v722_v28 }
 0x25d   : > { %v713_v30 = vpop.f32.mrf.mxu1 }
 0x25e   : > { %v714_v31 = vadd.f32 %v713_v30, %v2391_v29 }
 0x260   : > { %v725_v32 = vsel %vm631_vm0, %v714_v31, -inf }
 0x261   : > { %726 = vmax.xlane.f32.xlu2 %v725_v32 }
 0x26d   : > { %1767 = vrot.lane.b32.xlu0 %v1766_v33, %s2685_s14  ;;  %v2124_v33 = vmov 32.0  }
 0x279   : > { %1762 = vrot.lane.b32.xlu2 %v1761_v34, %s2685_s14 }
 0x2bc   : > { %v718_v35 = vpop.xlane.xlu1 %717 }
 0x2bd   : > { %v728_v36 = vsub.f32 %v705_v19, %v718_v35 }
 0x2bf   : > { %v732_v37 = vmul.f32 1.442695, %v728_v36 }
 0x2c1   : > { %1797 = vpow2.f32 %v732_v37 }
 0x2c4   : > { %v721_v38 = vpop.xlane.xlu2 %720 }
 0x2c5   : > { %v729_v39 = vsub.f32 %v708_v23, %v721_v38 }
 0x2c7   : > { %v1798_v40 = vpop.eup %1797  ;;  %v734_v41 = vmul.f32 1.442695, %v729_v39 }
 0x2c8   : > { %v740_v42 = vsel %vm631_vm0, %v1798_v40, 0.0 }
 0x2c9   : > { %1799 = vpow2.f32 %v734_v41  ;;  %741 = vadd.xlane.f32.xlu1 %v740_v42 }
 0x2cc   : > { %v724_v43 = vpop.xlane.xlu0 %723 }
 0x2cd   : > { %v730_v44 = vsub.f32 %v711_v27, %v724_v43  ;;  %v1782_v27 = vld [vmem:[%s2667_s6] ss:$0 sm:$0xff] }
 0x2cf   : > { %v1800_v45 = vpop.eup %1799  ;;  %v736_v46 = vmul.f32 1.442695, %v730_v44  ;;  %v613_v44 = vld [vmem:[%s2668_s7 + $0x18] sm:$0xff] }
 0x2d0   : > { %v743_v47 = vsel %vm631_vm0, %v1800_v45, 0.0  ;;  %912 = vmatpush.msra.mxu0 %v613_v44  ;;  %v2125_v44 = vmov -1.0  }
 0x2d1   : > { %1801 = vpow2.f32 %v736_v46  ;;  %744 = vadd.xlane.f32.xlu1 %v743_v47  ;;  %v611_v46 = vld [vmem:[%s2668_s7 + $0x8] sm:$0xff]  ;;  %v610_v47 = vld [vmem:[%s2668_s7] sm:$0xff] }
 0x2d4   : > { %v727_v48 = vpop.xlane.xlu2 %726 }
 0x2d5   : > { %v731_v49 = vsub.f32 %v714_v31, %v727_v48 }
 0x2d7   : > { %v1802_v50 = vpop.eup %1801  ;;  %v738_v51 = vmul.f32 1.442695, %v731_v49 }
 0x2d8   : > { %v746_v52 = vsel %vm631_vm0, %v1802_v50, 0.0 }
 0x2d9   : > { %1803 = vpow2.f32 %v738_v51  ;;  %747 = vadd.xlane.f32.xlu1 %v746_v52 }
 0x2dc   : > { %v1763_v53 = vpop.permute.xlu2 %1762 }
 0x2dd   : > { %v1764_v54 = vunpack.i.l.bf16 %v1763_v53  ;;  %v1765_v57 = vunpack.i.h.bf16 %v1763_v53 }
 0x2df   : > { %v1804_v55 = vpop.eup %1803  ;;  %v1768_v56 = vpop.permute.xlu0 %1767  ;;  %796 = vmatpush.msra.mxu2 %v1764_v54 }
 0x2e0   : > { %v749_v58 = vsel %vm631_vm0, %v1804_v55, 0.0  ;;  %v1769_v59 = vunpack.i.l.bf16 %v1768_v56  ;;  %v1770_v60 = vunpack.i.h.bf16 %v1768_v56 }
 0x2e1   : > { %797 = vmatpush.msra.mxu2 %v1765_v57  ;;  %750 = vadd.xlane.f32.xlu1 %v749_v58  ;;  %v1783_v57 = vld [vmem:[%s2672_s11] ss:$0 sm:$0xff] }
 0x2e3   : > { %798 = vmatpush.msra.mxu2 %v1769_v59 }
 0x2e5   : > { %799 = vmatpush.msra.mxu2 %v1770_v60  ;;  %v1784_v60 = vld [vmem:[%s2709_s15] ss:$0 sm:$0xff] }
 0x33c   : > { %v742_v61 = vpop.xlane.xlu1 %741 }
 0x33d   : > { %1805 = vrcp.f32 %v742_v61 }
 0x343   : > { %v1806_v62 = vpop.eup %1805 }
 0x344   : > { %v745_v63 = vpop.xlane.xlu1 %744  ;;  %v756_v0 = vmul.f32 %v1806_v62, %v1798_v40 }
 0x345   : > { %1807 = vrcp.f32 %v745_v63  ;;  %v1785_v63 = vld [vmem:[#allocation8] ss:$0 sm:$0xff] }
 0x346   : > { %1598 = vmatmul.msk.f32.vlgmr.msra.gmra.mxu2 %vm631_vm0, %v756_v0 }
 0x34b   : > { %v1808_v1 = vpop.eup %1807 }
 0x34c   : > { %v748_v2 = vpop.xlane.xlu1 %747  ;;  %v757_v3 = vmul.f32 %v1808_v1, %v1800_v45  ;;  %v612_v45 = vld [vmem:[%s2668_s7 + $0x10] sm:$0xff] }
 0x34d   : > { %1809 = vrcp.f32 %v748_v2  ;;  %913 = vmatpush.msra.mxu0 %v612_v45 }
 0x34e   : > { %1599 = vmatmul.msk.f32.gmra.mxu2 %vm631_vm0, %v757_v3 }
 0x34f   : > { %914 = vmatpush.msra.mxu0 %v611_v46 }
 0x351   : > { %915 = vmatpush.msra.mxu0 %v610_v47 }
 0x353   : > { %v1810_v4 = vpop.eup %1809 }
 0x354   : > { %v751_v5 = vpop.xlane.xlu1 %750  ;;  %v758_v7 = vmul.f32 %v1810_v4, %v1802_v50 }
 0x355   : > { %1811 = vrcp.f32 %v751_v5 }
 0x356   : > { %1600 = vmatmul.msk.f32.gmra.mxu2 %vm631_vm0, %v758_v7  ;;  %1813 = vrcp.f32 %v2124_v33  ;;  %v622_v7 = vld [vmem:[%s2710_s28 + $0x38] sm:$0xff] }
 0x357   : > { %975 = vmatpush.msrb.mxu3 %v622_v7 }
 0x35b   : > { %v1812_v8 = vpop.eup %1811 }
 0x35c   : > { %v759_v9 = vmul.f32 %v1812_v8, %v1804_v55  ;;  %v1814_v34 = vpop.eup %1813  ;;  %v621_v8 = vld [vmem:[%s2710_s28 + $0x30] sm:$0xff] }
 0x35d   : > { %v861_v35 = vmul.f32 32.0, %v1814_v34  ;;  %vm865_vm4 = vweird.f32 %v1814_v34  ;;  %976 = vmatpush.msrb.mxu3 %v621_v8 }
 0x35e   : > { %1601 = vmatmul.msk.f32.gmra.mxu2 %vm631_vm0, %v759_v9  ;;  %v620_v9 = vld [vmem:[%s2710_s28 + $0x28] sm:$0xff] }
 0x35f   : > { %v862_v36 = vsub.f32 1.0, %v861_v35  ;;  %977 = vmatpush.msrb.mxu3 %v620_v9 }
 0x361   : > { %v863_v37 = vmul.f32 %v1814_v34, %v862_v36 }
 0x363   : > { %v864_v38 = vadd.f32 %v1814_v34, %v863_v37 }
 0x365   : > { %v2429_v39 = vsel %vm865_vm4, %v1814_v34, %v864_v38 }
 0x3c9   : > { %v801_v10 = vpop.f32.mrf.mxu2 }
 0x3d1   : > { %v804_v11 = vpop.f32.mrf.mxu2 }
 0x3d2   : > { %814 = vrot.lane.b32.xlu0 %v804_v11, %s2683_s26  ;;  %s2711_s26 = sld [smem:[#allocation23_spill]] }
 0x3d9   : > { %v807_v12 = vpop.f32.mrf.mxu2 }
 0x3da   : > { %818 = vrot.lane.b32.xlu2 %v807_v12, %s2682_s17  ;;  %v618_v12 = vld [vmem:[%s2710_s28 + $0x18] sm:$0xff] }
 0x3e1   : > { %v810_v13 = vpop.f32.mrf.mxu2 }
 0x3e2   : > { %822 = vrot.lane.b32.xlu1 %v810_v13, %s2684_s10  ;;  %s2718_s10 = sshll.u32 %s2323_s27, 3 }
 0x3e3   : > { %s592_s9 = scalar_lea.vmem [#allocation13], %s2718_s10 }
 0x3e4   : > { %s1450_s24 = sshll.u32 %s592_s9, 4  ;;  %s1451_s24 = int_to_ptr.vmem [resolvable:$true] %s1450_s24 }
 0x434   : > { %v819_v22 = vpop.permute.xlu2 %818 }
 0x444   : > { %v815_v19 = vpop.permute.xlu0 %814 }
 0x445   : > { %v825_v20 = vsel %vm670_vm1, %v801_v10, %v815_v19  ;;  %v619_v10 = vld [vmem:[%s2710_s28 + $0x20] sm:$0xff] }
 0x446   : > { %v827_v24 = vsel %vm826_vm2, %v825_v20, %v819_v22  ;;  %978 = vmatpush.msrb.mxu3 %v619_v10  ;;  %v615_v22 = vld [vmem:[%s2710_s28] sm:$0xff]  ;;  %v1787_v10 = vld [vmem:[#allocation10] ss:$0 sm:$0xff] }
 0x448   : > { %979 = vmatpush.msrb.mxu3 %v618_v12 }
 0x44a   : > { %980 = vmatpush.msrb.mxu3 %v617_v14 }
 0x44c   : > { %981 = vmatpush.msrb.mxu3 %v616_v18 }
 0x44e   : > { %982 = vmatpush.msrb.mxu3 %v615_v22 }
 0x454   : > { %v823_v23 = vpop.permute.xlu1 %822 }
 0x455   : > { %v829_v26 = vsel %vm828_vm3, %v827_v24, %v823_v23 }
 0x456   : > { %1602 = vmatmul.msk.f32.vlgmr.msra.gmra.mxu3 %vm631_vm0, %v829_v26 }
 0x4d9   : > { %v853_v28 = vpop.f32.mrf.mxu3 }
 0x4da   : > { %v854_v30 = vadd.f32 %v1782_v27, %v853_v28 }
 0x4dc   : > { %v856_v31 = vadd.f32 %v854_v30, %v2357_v6 }
 0x4de   : > { %v857_v32 = vsel %vm631_vm0, %v856_v31, 0.0 }
 0x4df   : > { %858 = vadd.xlane.f32.xlu0 %v857_v32 }
 0x552   : > { %v859_v40 = vpop.xlane.xlu0 %858 }
 0x553   : > { %v867_v41 = vmul.f32 %v2429_v39, %v859_v40 }
 0x555   : > { %v868_v42 = vsub.f32 %v856_v31, %v867_v41 }
 0x557   : > { %v869_v43 = vmul.f32 %v868_v42, %v868_v42 }
 0x559   : > { %v870_v6 = vsel %vm631_vm0, %v869_v43, 0.0 }
 0x55a   : > { %871 = vadd.xlane.f32.xlu2 %v870_v6 }
 0x5cd   : > { %v872_v48 = vpop.xlane.xlu2 %871 }
 0x5ce   : > { %v873_v49 = vmul.f32 %v872_v48, %v2429_v39 }
 0x5d0   : > { %v874_v50 = vadd.f32 1e-05, %v873_v49 }
 0x5d2   : > { %1815 = vrsqrt.f32 %v874_v50  ;;  %vm881_vm6 = vweird.f32 %v874_v50 }
 0x5d8   : > { %v1816_v51 = vpop.eup %1815 }
 0x5d9   : > { %v876_v52 = vmul.f32 %v1816_v51, %v874_v50  ;;  %vm882_vm5 = vweird.f32 %v1816_v51  ;;  %v1786_v50 = vld [vmem:[%s2711_s26] ss:$0 sm:$0xff] }
 0x5da   : > { %vm883_vm7 = vmor %vm881_vm6, %vm882_vm5 }
 0x5db   : > { %v877_v53 = vmul.f32 %v1816_v51, %v876_v52 }
 0x5dd   : > { %v878_v54 = vmul.f32 0.5, %v877_v53 }
 0x5df   : > { %v879_v55 = vsub.f32 1.5, %v878_v54 }
 0x5e1   : > { %v880_v56 = vmul.f32 %v1816_v51, %v879_v55 }
 0x5e3   : > { %v884_v58 = vsel %vm883_vm7, %v1816_v51, %v880_v56 }
 0x5e4   : > { %v885_v59 = vmul.f32 %v884_v58, %v868_v42 }
 0x5e6   : > { %v889_v61 = vmul.f32 %v1783_v57, %v885_v59 }
 0x5e8   : > { %v2452_v62 = vadd.f32 %v1784_v60, %v889_v61  ;;  %v1608_v60 = vld [vmem:[%s2664_s3 + $0x38] sm:$0xff]  ;;  %v1607_v61 = vld [vmem:[%s2664_s3 + $0x30] sm:$0xff] }
 0x5e9   : > { %1076 = vmatpush.msrb.mxu0 %v1608_v60 }
 0x5ea   : > { %1603 = vmatmul.msk.f32.vlgmr.msra.gmra.mxu0 %vm631_vm0, %v2452_v62 }
 0x5eb   : > { %1077 = vmatpush.msrb.mxu0 %v1607_v61 }
 0x667   : > { %v917_v0 = vpop.f32.mrf.mxu0 }
 0x668   : > { %v918_v1 = vadd.f32 %v1785_v63, %v917_v0  ;;  %v1605_v63 = vld [vmem:[%s2664_s3 + $0x20] sm:$0xff] }
 0x66a   : > { %v921_v2 = vmul.f32 0.70710677, %v918_v1  ;;  %v920_v47 = vmul.f32 0.5, %v918_v1 }
 0x66c   : > { %v924_v3 = vand.u32 2147483647, %v921_v2  ;;  %vm922_vm12 = vcmp.ge.f32.partialorder %v921_v2, 0.0 }
 0x66d   : > { %v923_v45 = vsel %vm922_vm12, 1.0, %v2125_v44 }
 0x66e   : > { %v925_v4 = vmul.f32 0.3275911, %v924_v3  ;;  %v951_v28 = vsub.f32 0.0, %v924_v3 }
 0x670   : > { %v926_v5 = vadd.f32 1.0, %v925_v4  ;;  %v952_v32 = vmul.f32 %v951_v28, %v924_v3 }
 0x672   : > { %1817 = vrcp.f32 %v926_v5  ;;  %v938_v16 = vand.u32 2147483648, %v926_v5  ;;  %v936_v20 = vand.u32 2147483647, %v926_v5  ;;  %vm932_vm9 = vweird.f32 %v926_v5 }
 0x673   : > { %v953_v35 = vmul.f32 1.442695, %v952_v32 }
 0x674   : > { %v939_v24 = vor.u32 1.1754944e-38, %v938_v16  ;;  %vm937_vm11 = vcmp.eq.f32.partialorder %v936_v20, 8.507059e+37  ;;  %v1789_v16 = vld [vmem:[%s2665_s4 + $0x1] ss:$0 sm:$0xff] }
 0x675   : > { %1819 = vpow2.f32 %v953_v35 }
 0x678   : > { %v1818_v11 = vpop.eup %1817 }
 0x679   : > { %v928_v13 = vmul.f32 %v1818_v11, %v926_v5  ;;  %vm933_vm8 = vweird.f32 %v1818_v11 }
 0x67a   : > { %vm934_vm10 = vmor %vm932_vm9, %vm933_vm8 }
 0x67b   : > { %v929_v15 = vsub.f32 1.0, %v928_v13  ;;  %v1820_v42 = vpop.eup %1819  ;;  %v1788_v13 = vld [vmem:[#allocation11] ss:$0 sm:$0xff] }
 0x67d   : > { %v930_v19 = vmul.f32 %v1818_v11, %v929_v15 }
 0x67f   : > { %v931_v23 = vadd.f32 %v1818_v11, %v930_v19 }
 0x681   : > { %v935_v26 = vsel %vm934_vm10, %v1818_v11, %v931_v23 }
 0x682   : > { %v940_v27 = vsel %vm937_vm11, %v939_v24, %v935_v26 }
 0x683   : > { %v942_v30 = vmul.f32 1.0614054, %v940_v27 }
 0x685   : > { %v943_v31 = vadd.f32 -1.4531521, %v942_v30 }
 0x687   : > { %v944_v33 = vmul.f32 %v943_v31, %v940_v27 }
 0x689   : > { %v945_v34 = vadd.f32 1.4214138, %v944_v33 }
 0x68b   : > { %v946_v36 = vmul.f32 %v945_v34, %v940_v27 }
 0x68d   : > { %v947_v37 = vadd.f32 -0.28449672, %v946_v36 }
 0x68f   : > { %v948_v38 = vmul.f32 %v947_v37, %v940_v27 }
 0x691   : > { %v949_v40 = vadd.f32 0.2548296, %v948_v38 }
 0x693   : > { %v950_v41 = vmul.f32 %v949_v40, %v940_v27 }
 0x695   : > { %v955_v43 = vmul.f32 %v1820_v42, %v950_v41 }
 0x697   : > { %v956_v6 = vsub.f32 1.0, %v955_v43 }
 0x699   : > { %v957_v46 = vmul.f32 %v956_v6, %v923_v45 }
 0x69b   : > { %v958_v48 = vadd.f32 1.0, %v957_v46 }
 0x69d   : > { %v959_v49 = vmul.f32 %v958_v48, %v920_v47 }
 0x69f   : > { %1604 = vmatmul.msk.f32.vlgmr.msrb.gmra.mxu3 %vm963_vm13, %v959_v49 }
 0x722   : > { %v984_v51 = vpop.f32.mrf.mxu3 }
 0x723   : > { %v985_v52 = vadd.f32 %v1786_v50, %v984_v51 }
 0x725   : > { %v987_v53 = vadd.f32 %v985_v52, %v2452_v62  ;;  %v1606_v62 = vld [vmem:[%s2664_s3 + $0x28] sm:$0xff] }
 0x726   : > { %1078 = vmatpush.msrb.mxu0 %v1606_v62 }
 0x727   : > { %v988_v54 = vsel %vm631_vm0, %v987_v53, 0.0 }
 0x728   : > { %989 = vadd.xlane.f32.xlu1 %v988_v54  ;;  %1079 = vmatpush.msrb.mxu0 %v1605_v63 }
 0x79b   : > { %v990_v55 = vpop.xlane.xlu1 %989 }
 0x79c   : > { %v991_v56 = vmul.f32 %v990_v55, %v2429_v39 }
 0x79e   : > { %v992_v57 = vsub.f32 %v987_v53, %v991_v56 }
 0x7a0   : > { %v993_v58 = vmul.f32 %v992_v57, %v992_v57 }
 0x7a2   : > { %v994_v59 = vsel %vm631_vm0, %v993_v58, 0.0 }
 0x7a3   : > { %995 = vadd.xlane.f32.xlu0 %v994_v59 }
 0x816   : > { %v996_v0 = vpop.xlane.xlu0 %995 }
 0x817   : > { %v997_v1 = vmul.f32 %v996_v0, %v2429_v39 }
 0x819   : > { %v998_v2 = vadd.f32 1e-05, %v997_v1 }
 0x81b   : > { %1821 = vrsqrt.f32 %v998_v2  ;;  %vm1005_vm15 = vweird.f32 %v998_v2 }
 0x821   : > { %v1822_v3 = vpop.eup %1821 }
 0x822   : > { %v1000_v4 = vmul.f32 %v1822_v3, %v998_v2  ;;  %vm1006_vm14 = vweird.f32 %v1822_v3 }
 0x823   : > { %vm1007_vm4 = vmor %vm1005_vm15, %vm1006_vm14 }
 0x824   : > { %v1001_v5 = vmul.f32 %v1822_v3, %v1000_v4 }
 0x826   : > { %v1002_v7 = vmul.f32 0.5, %v1001_v5 }
 0x828   : > { %v1003_v8 = vsub.f32 1.5, %v1002_v7 }
 0x82a   : > { %v1004_v9 = vmul.f32 %v1822_v3, %v1003_v8 }
 0x82c   : > { %v1008_v11 = vsel %vm1007_vm4, %v1822_v3, %v1004_v9 }
 0x82d   : > { %v1009_v12 = vmul.f32 %v1008_v11, %v992_v57 }
 0x82f   : > { %v1013_v14 = vmul.f32 %v1787_v10, %v1009_v12 }
 0x831   : > { %v2502_v15 = vadd.f32 %v1788_v13, %v1013_v14 }
 0x833   : > { %1630 = vmatmul.msk.f32.vlgmr.msrb.gmra.mxu0 %vm631_vm0, %v2502_v15 }
 0x8b0   : > { %v1081_v18 = vpop.f32.mrf.mxu0 }
 0x8b1   : > { %v1082_v19 = vadd.f32 %v1789_v16, %v1081_v18 }
 0x8b3   : > { %1085 = vrot.lane.b32.xlu1 %v1082_v19, %s2116_s8  ;;  %1087 = vrot.lane.b32.xlu0 %v1082_v19, %s2118_s13  ;;  %s2713_s8 = smov 64   ;;  %s2715_s13 = smov 16  }
 0x8b4   : > { %1089 = vrot.lane.b32.xlu2 %v1082_v19, %s2117_s23  ;;  %s2714_s23 = smov 8  }
 0x90e   : > { %v1090_v20 = vpop.permute.xlu2 %1089 }
 0x90f   : > { %1097 = vrot.lane.b32.xlu2 %v1090_v20, %s2712_s12 }
 0x925   : > { %v1086_v22 = vpop.permute.xlu1 %1085  ;;  %v1088_v23 = vpop.permute.xlu0 %1087 }
 0x926   : > { %1095 = vrot.lane.b32.xlu0 %v1088_v23, %s2712_s12  ;;  %1093 = vrot.lane.b32.xlu2 %v1086_v22, %s2712_s12  ;;  %v1771_v42 = vpack.i.bf16 %v1088_v23, %v1090_v20  ;;  %v1776_v43 = vpack.i.bf16 %v1082_v19, %v1086_v22 }
 0x92e   : > { %1091 = vrot.lane.b32.xlu0 %v1082_v19, %s2712_s12 }
 0x969   : > { %v1098_v24 = vpop.permute.xlu2 %1097 }
 0x96a   : > { %1631 = vmatpush.xpose.msk.msra.mxu0 %vm670_vm1, %v1098_v24  ;;  %v1612_v24 = vld [vmem:[%s2666_s5 + $0x30] sm:$0xff] }
 0x980   : > { %v1094_v27 = vpop.permute.xlu2 %1093 }
 0x998   : > { %v1096_v26 = vpop.permute.xlu0 %1095 }
 0x999   : > { %1632 = vmatpush.xpose.msk.msra.mxu0 %vm670_vm1, %v1096_v26  ;;  %v1611_v26 = vld [vmem:[%s2666_s5 + $0x28] sm:$0xff] }
 0x99d   : > { %1633 = vmatpush.xpose.msk.msra.mxu0 %vm670_vm1, %v1094_v27  ;;  %v1610_v27 = vld [vmem:[%s2666_s5 + $0x20] sm:$0xff] }
 0x9a0   : > { %v1092_v28 = vpop.permute.xlu0 %1091 }
 0x9a1   : > { %1634 = vmatpush.xpose.msk.msra.mxu0 %vm670_vm1, %v1092_v28 }
 0x9a4   : > { %1635 = vmatmul.msk.f32.vlgmr.msra.gmra.mxu0 %vm670_vm1, %v1082_v19 }
 0x9ac   : > { %1636 = vmatmul.msk.f32.gmra.mxu0 %vm670_vm1, %v1086_v22 }
 0x9b4   : > { %1637 = vmatmul.msk.f32.gmra.mxu0 %vm670_vm1, %v1088_v23  ;;  %v1613_v23 = vld [vmem:[%s2666_s5 + $0x38] sm:$0xff] }
 0x9b5   : > { %1274 = vmatpush.msrb.mxu2 %v1613_v23 }
 0x9b7   : > { %1275 = vmatpush.msrb.mxu2 %v1612_v24 }
 0x9b9   : > { %1276 = vmatpush.msrb.mxu2 %v1611_v26 }
 0x9bb   : > { %1277 = vmatpush.msrb.mxu2 %v1610_v27 }
 0x9bc   : > { %1638 = vmatmul.msk.f32.gmra.mxu0 %vm670_vm1, %v1090_v20 }
 0xa21   : > { %v1132_v30 = vpop.f32.mrf.mxu0 }
 0xa22   : > { %v1133_v31 = vadd.f32 %v1132_v30, %v2379_v17 }
 0xa24   : > { %v1144_v32 = vsel %vm631_vm0, %v1133_v31, -inf }
 0xa25   : > { %1145 = vmax.xlane.f32.xlu2 %v1144_v32 }
 0xa29   : > { %v1135_v33 = vpop.f32.mrf.mxu0 }
 0xa2a   : > { %v1136_v34 = vadd.f32 %v1135_v33, %v2383_v21 }
 0xa2c   : > { %v1147_v35 = vsel %vm631_vm0, %v1136_v34, -inf }
 0xa2d   : > { %1148 = vmax.xlane.f32.xlu0 %v1147_v35  ;;  %v1790_v35 = vld [vmem:[%s2667_s6 + $0x1] ss:$0 sm:$0xff] }
 0xa31   : > { %v1138_v36 = vpop.f32.mrf.mxu0 }
 0xa32   : > { %v1139_v37 = vadd.f32 %v1138_v36, %v2387_v25 }
 0xa34   : > { %v1150_v38 = vsel %vm631_vm0, %v1139_v37, -inf }
 0xa35   : > { %1151 = vmax.xlane.f32.xlu1 %v1150_v38 }
 0xa39   : > { %v1141_v40 = vpop.f32.mrf.mxu0 }
 0xa3a   : > { %v1142_v41 = vadd.f32 %v1141_v40, %v2391_v29 }
 0xa3c   : > { %v1153_v17 = vsel %vm631_vm0, %v1142_v41, -inf }
 0xa3d   : > { %1154 = vmax.xlane.f32.xlu2 %v1153_v17 }
 0xa4e   : > { %1772 = vrot.lane.b32.xlu1 %v1771_v42, %s2713_s8 }
 0xa55   : > { %1777 = vrot.lane.b32.xlu2 %v1776_v43, %s2713_s8  ;;  %s1647_s8 = sshll.u32 %s2230_s25, 3  ;;  %s1438_s25 = scalar_lea.sflag [#allocation4], %s2323_s27 }
 0xa98   : > { %v1146_v21 = vpop.xlane.xlu2 %1145 }
 0xa99   : > { %v1156_v6 = vsub.f32 %v1133_v31, %v1146_v21 }
 0xa9b   : > { %v1160_v45 = vmul.f32 1.442695, %v1156_v6 }
 0xa9d   : > { %1823 = vpow2.f32 %v1160_v45  ;;  %v1616_v45 = vld [vmem:[%s2668_s7 + $0x28] sm:$0xff] }
 0xaa0   : > { %v1149_v25 = vpop.xlane.xlu0 %1148 }
 0xaa1   : > { %v1157_v46 = vsub.f32 %v1136_v34, %v1149_v25  ;;  %v1615_v25 = vld [vmem:[%s2668_s7 + $0x20] sm:$0xff] }
 0xaa3   : > { %v1824_v47 = vpop.eup %1823  ;;  %v1162_v48 = vmul.f32 1.442695, %v1157_v46 }
 0xaa4   : > { %v1168_v49 = vsel %vm631_vm0, %v1824_v47, 0.0 }
 0xaa5   : > { %1825 = vpow2.f32 %v1162_v48  ;;  %1169 = vadd.xlane.f32.xlu0 %v1168_v49 }
 0xaa8   : > { %v1152_v29 = vpop.xlane.xlu1 %1151 }
 0xaa9   : > { %v1158_v50 = vsub.f32 %v1139_v37, %v1152_v29 }
 0xaab   : > { %v1826_v51 = vpop.eup %1825  ;;  %v1164_v52 = vmul.f32 1.442695, %v1158_v50 }
 0xaac   : > { %v1171_v53 = vsel %vm631_vm0, %v1826_v51, 0.0 }
 0xaad   : > { %1827 = vpow2.f32 %v1164_v52  ;;  %1172 = vadd.xlane.f32.xlu0 %v1171_v53 }
 0xab0   : > { %v1155_v54 = vpop.xlane.xlu2 %1154 }
 0xab1   : > { %v1159_v55 = vsub.f32 %v1142_v41, %v1155_v54  ;;  %v1618_v41 = vld [vmem:[%s2668_s7 + $0x38] sm:$0xff]  ;;  %v1791_v54 = vld [vmem:[%s2672_s11 + $0x1] ss:$0 sm:$0xff] }
 0xab2   : > { %1331 = vmatpush.msra.mxu1 %v1618_v41 }
 0xab3   : > { %v1828_v56 = vpop.eup %1827  ;;  %v1166_v57 = vmul.f32 1.442695, %v1159_v55 }
 0xab4   : > { %v1174_v58 = vsel %vm631_vm0, %v1828_v56, 0.0 }
 0xab5   : > { %1829 = vpow2.f32 %v1166_v57  ;;  %1175 = vadd.xlane.f32.xlu0 %v1174_v58  ;;  %v1792_v57 = vld [vmem:[%s2709_s15 + $0x1] ss:$0 sm:$0xff] }
 0xab8   : > { %v1778_v63 = vpop.permute.xlu2 %1777 }
 0xab9   : > { %v1779_v1 = vunpack.i.l.bf16 %v1778_v63  ;;  %v1780_v2 = vunpack.i.h.bf16 %v1778_v63 }
 0xabb   : > { %v1830_v59 = vpop.eup %1829 }
 0xabc   : > { %v1177_v60 = vsel %vm631_vm0, %v1830_v59, 0.0 }
 0xabd   : > { %1178 = vadd.xlane.f32.xlu0 %v1177_v60  ;;  %v1793_v60 = vld [vmem:[#allocation8 + $0x1] ss:$0 sm:$0xff] }
 0xac0   : > { %v1773_v61 = vpop.permute.xlu1 %1772 }
 0xac1   : > { %v1774_v62 = vunpack.i.l.bf16 %v1773_v61  ;;  %v1775_v0 = vunpack.i.h.bf16 %v1773_v61 }
 0xac3   : > { %1224 = vmatpush.msra.mxu3 %v1774_v62 }
 0xac5   : > { %1225 = vmatpush.msra.mxu3 %v1775_v0 }
 0xac7   : > { %1226 = vmatpush.msra.mxu3 %v1779_v1 }
 0xac9   : > { %1227 = vmatpush.msra.mxu3 %v1780_v2 }
 0xb18   : > { %v1170_v3 = vpop.xlane.xlu0 %1169 }
 0xb19   : > { %1831 = vrcp.f32 %v1170_v3  ;;  %v1626_v3 = vld [vmem:[%s2710_s28 + $0x78] sm:$0xff] }
 0xb1a   : > { %1393 = vmatpush.msra.mxu2 %v1626_v3 }
 0xb1f   : > { %v1832_v4 = vpop.eup %1831 }
 0xb20   : > { %v1184_v5 = vmul.f32 %v1832_v4, %v1824_v47  ;;  %v1173_v7 = vpop.xlane.xlu0 %1172  ;;  %v1625_v4 = vld [vmem:[%s2710_s28 + $0x70] sm:$0xff] }
 0xb21   : > { %1833 = vrcp.f32 %v1173_v7  ;;  %1394 = vmatpush.msra.mxu2 %v1625_v4  ;;  %v1623_v7 = vld [vmem:[%s2710_s28 + $0x60] sm:$0xff] }
 0xb22   : > { %1639 = vmatmul.msk.f32.vlgmr.msra.gmra.mxu3 %vm631_vm0, %v1184_v5  ;;  %v1624_v5 = vld [vmem:[%s2710_s28 + $0x68] sm:$0xff] }
 0xb23   : > { %1395 = vmatpush.msra.mxu2 %v1624_v5 }
 0xb25   : > { %1396 = vmatpush.msra.mxu2 %v1623_v7 }
 0xb27   : > { %v1834_v8 = vpop.eup %1833 }
 0xb28   : > { %v1176_v9 = vpop.xlane.xlu0 %1175  ;;  %v1185_v10 = vmul.f32 %v1834_v8, %v1826_v51 }
 0xb29   : > { %1835 = vrcp.f32 %v1176_v9  ;;  %v1622_v9 = vld [vmem:[%s2710_s28 + $0x58] sm:$0xff] }
 0xb2a   : > { %1640 = vmatmul.msk.f32.gmra.mxu3 %vm631_vm0, %v1185_v10  ;;  %1397 = vmatpush.msra.mxu2 %v1622_v9 }
 0xb2f   : > { %v1836_v11 = vpop.eup %1835 }
 0xb30   : > { %v1179_v12 = vpop.xlane.xlu0 %1178  ;;  %v1186_v13 = vmul.f32 %v1836_v11, %v1828_v56  ;;  %v1621_v11 = vld [vmem:[%s2710_s28 + $0x50] sm:$0xff] }
 0xb31   : > { %1837 = vrcp.f32 %v1179_v12  ;;  %1398 = vmatpush.msra.mxu2 %v1621_v11 }
 0xb32   : > { %1641 = vmatmul.msk.f32.gmra.mxu3 %vm631_vm0, %v1186_v13 }
 0xb37   : > { %v1838_v14 = vpop.eup %1837 }
 0xb38   : > { %v1187_v16 = vmul.f32 %v1838_v14, %v1830_v59  ;;  %v1620_v14 = vld [vmem:[%s2710_s28 + $0x48] sm:$0xff] }
 0xb39   : > { %1399 = vmatpush.msra.mxu2 %v1620_v14 }
 0xb3a   : > { %1642 = vmatmul.msk.f32.gmra.mxu3 %vm631_vm0, %v1187_v16 }
 0xba5   : > { %v1229_v18 = vpop.f32.mrf.mxu3 }
 0xbad   : > { %v1232_v19 = vpop.f32.mrf.mxu3 }
 0xbae   : > { %1242 = vrot.lane.b32.xlu1 %v1232_v19, %s2714_s23  ;;  %v1619_v19 = vld [vmem:[%s2710_s28 + $0x40] sm:$0xff] }
 0xbaf   : > { %1400 = vmatpush.msra.mxu2 %v1619_v19 }
 0xbb5   : > { %v1235_v20 = vpop.f32.mrf.mxu3 }
 0xbb6   : > { %1246 = vrot.lane.b32.xlu2 %v1235_v20, %s2715_s13 }
 0xbbd   : > { %v1238_v22 = vpop.f32.mrf.mxu3 }
 0xbbe   : > { %1250 = vrot.lane.b32.xlu0 %v1238_v22, %s2716_s29  ;;  %s2717_s29 = sld [smem:[#allocation27_spill]] }
 0xbc4   : > { %s1448_s14 = scalar_lea.hbm %s2717_s29, %s1647_s8  ;;  %s2047_s13 = scalar_lea.hbm %s2717_s29, 16 }
 0xbc5   : > { %s1452_s2 = sshll.u32 %s1448_s14, 4  ;;  %s1453_s2 = int_to_ptr.hbm [resolvable:$true] %s1452_s2 }
 0xbc6   : > { %s2041_s17 = sshra.s32 %s1453_s2, 4  ;;  %s2042_s17 = int_to_ptr.hbm [resolvable:$true] %s2041_s17 }
 0xbc7   : > { %s2043_s12 = scalar_lea.hbm %s2042_s17, 8  ;;  %p2048_p12 = scmp.lt.s32.totalorder %s2042_s17, %s2717_s29 }
 0xbc8   : > { %p2044_p1 = scmp.ne.s32.totalorder %s2042_s17, %s2043_s12  ;;  %p2049_p8 = scmp.lt.s32.totalorder %s2047_s13, %s2043_s12 }
 0xbca   : > { %p2045_p3 = pnand %p2044_p1, %p2292_p13  ;;  %p2050_p7 = por %p2049_p8, %p2048_p12 }
 0xbcc   : > { %p2046_p4 = pneg %p2045_p3 }
 0xbce   : > { %p2051_p9 = pnand %p2050_p7, %p2046_p4 }
 0xc10   : > { %v1247_v31 = vpop.permute.xlu2 %1246 }
 0xc20   : > { %v1243_v28 = vpop.permute.xlu1 %1242 }
 0xc21   : > { %v1253_v30 = vsel %vm670_vm1, %v1229_v18, %v1243_v28 }
 0xc22   : > { %v1254_v32 = vsel %vm826_vm2, %v1253_v30, %v1247_v31 }
 0xc30   : > { %v1251_v33 = vpop.permute.xlu0 %1250 }
 0xc31   : > { %v1255_v34 = vsel %vm828_vm3, %v1254_v32, %v1251_v33 }
 0xc32   : > { %1643 = vmatmul.msk.f32.vlgmr.msrb.gmra.mxu2 %vm631_vm0, %v1255_v34 }
 0xcb5   : > { %v1279_v36 = vpop.f32.mrf.mxu2 }
 0xcb6   : > { %v1280_v37 = vadd.f32 %v1790_v35, %v1279_v36 }
 0xcb8   : > { %v1282_v38 = vadd.f32 %v1280_v37, %v2502_v15  ;;  %v1617_v15 = vld [vmem:[%s2668_s7 + $0x30] sm:$0xff] }
 0xcb9   : > { %1332 = vmatpush.msra.mxu1 %v1617_v15 }
 0xcba   : > { %v1283_v40 = vsel %vm631_vm0, %v1282_v38, 0.0 }
 0xcbb   : > { %1284 = vadd.xlane.f32.xlu1 %v1283_v40  ;;  %1333 = vmatpush.msra.mxu1 %v1616_v45  ;;  %v1794_v45 = vld [vmem:[%s2711_s26 + $0x1] ss:$0 sm:$0xff] }
 0xcbd   : > { %1334 = vmatpush.msra.mxu1 %v1615_v25 }
 0xd2e   : > { %v1285_v17 = vpop.xlane.xlu1 %1284 }
 0xd2f   : > { %v1286_v42 = vmul.f32 %v1285_v17, %v2429_v39 }
 0xd31   : > { %v1287_v43 = vsub.f32 %v1282_v38, %v1286_v42 }
 0xd33   : > { %v1288_v21 = vmul.f32 %v1287_v43, %v1287_v43 }
 0xd35   : > { %v1289_v6 = vsel %vm631_vm0, %v1288_v21, 0.0 }
 0xd36   : > { %1290 = vadd.xlane.f32.xlu2 %v1289_v6 }
 0xda9   : > { %v1291_v46 = vpop.xlane.xlu2 %1290 }
 0xdaa   : > { %v1292_v47 = vmul.f32 %v1291_v46, %v2429_v39 }
 0xdac   : > { %v1293_v48 = vadd.f32 1e-05, %v1292_v47 }
 0xdae   : > { %1839 = vrsqrt.f32 %v1293_v48  ;;  %vm1300_vm2 = vweird.f32 %v1293_v48 }
 0xdb4   : > { %v1840_v49 = vpop.eup %1839 }
 0xdb5   : > { %v1295_v29 = vmul.f32 %v1840_v49, %v1293_v48  ;;  %vm1301_vm1 = vweird.f32 %v1840_v49 }
 0xdb6   : > { %vm1302_vm3 = vmor %vm1300_vm2, %vm1301_vm1 }
 0xdb7   : > { %v1296_v50 = vmul.f32 %v1840_v49, %v1295_v29 }
 0xdb9   : > { %v1297_v51 = vmul.f32 0.5, %v1296_v50 }
 0xdbb   : > { %v1298_v52 = vsub.f32 1.5, %v1297_v51 }
 0xdbd   : > { %v1299_v53 = vmul.f32 %v1840_v49, %v1298_v52 }
 0xdbf   : > { %v1303_v55 = vsel %vm1302_vm3, %v1840_v49, %v1299_v53 }
 0xdc0   : > { %v1304_v56 = vmul.f32 %v1303_v55, %v1287_v43 }
 0xdc2   : > { %v1308_v58 = vmul.f32 %v1791_v54, %v1304_v56 }
 0xdc4   : > { %v2587_v59 = vadd.f32 %v1792_v57, %v1308_v58 }
 0xdc6   : > { %1644 = vmatmul.msk.f32.vlgmr.msra.gmra.mxu1 %vm631_vm0, %v2587_v59 }
 0xe43   : > { %v1336_v61 = vpop.f32.mrf.mxu1 }
 0xe44   : > { %v1337_v62 = vadd.f32 %v1793_v60, %v1336_v61  ;;  %v1795_v61 = vld [vmem:[#allocation10 + $0x1] ss:$0 sm:$0xff] }
 0xe46   : > { %v1340_v63 = vmul.f32 0.70710677, %v1337_v62  ;;  %v1339_v21 = vmul.f32 0.5, %v1337_v62 }
 0xe48   : > { %v1343_v0 = vand.u32 2147483647, %v1340_v63  ;;  %vm1341_vm9 = vcmp.ge.f32.partialorder %v1340_v63, 0.0  ;;  %v1796_v63 = vld [vmem:[#allocation11 + $0x1] ss:$0 sm:$0xff] }
 0xe49   : > { %v1342_v42 = vsel %vm1341_vm9, 1.0, %v2125_v44 }
 0xe4a   : > { %v1344_v1 = vmul.f32 0.3275911, %v1343_v0  ;;  %v1370_v26 = vsub.f32 0.0, %v1343_v0 }
 0xe4c   : > { %v1345_v2 = vadd.f32 1.0, %v1344_v1  ;;  %v1371_v30 = vmul.f32 %v1370_v26, %v1343_v0 }
 0xe4e   : > { %1841 = vrcp.f32 %v1345_v2  ;;  %v1357_v13 = vand.u32 2147483648, %v1345_v2  ;;  %v1355_v18 = vand.u32 2147483647, %v1345_v2  ;;  %vm1351_vm6 = vweird.f32 %v1345_v2 }
 0xe4f   : > { %v1372_v33 = vmul.f32 1.442695, %v1371_v30 }
 0xe50   : > { %v1358_v22 = vor.u32 1.1754944e-38, %v1357_v13  ;;  %vm1356_vm8 = vcmp.eq.f32.partialorder %v1355_v18, 8.507059e+37 }
 0xe51   : > { %1843 = vpow2.f32 %v1372_v33 }
 0xe54   : > { %v1842_v8 = vpop.eup %1841 }
 0xe55   : > { %v1347_v10 = vmul.f32 %v1842_v8, %v1345_v2  ;;  %vm1352_vm5 = vweird.f32 %v1842_v8 }
 0xe56   : > { %vm1353_vm7 = vmor %vm1351_vm6, %vm1352_vm5 }
 0xe57   : > { %v1348_v12 = vsub.f32 1.0, %v1347_v10  ;;  %v1844_v40 = vpop.eup %1843 }
 0xe59   : > { %v1349_v16 = vmul.f32 %v1842_v8, %v1348_v12 }
 0xe5b   : > { %v1350_v20 = vadd.f32 %v1842_v8, %v1349_v16 }
 0xe5d   : > { %v1354_v23 = vsel %vm1353_vm7, %v1842_v8, %v1350_v20 }
 0xe5e   : > { %v1359_v24 = vsel %vm1356_vm8, %v1358_v22, %v1354_v23 }
 0xe5f   : > { %v1361_v27 = vmul.f32 1.0614054, %v1359_v24 }
 0xe61   : > { %v1362_v28 = vadd.f32 -1.4531521, %v1361_v27 }
 0xe63   : > { %v1363_v31 = vmul.f32 %v1362_v28, %v1359_v24 }
 0xe65   : > { %v1364_v32 = vadd.f32 1.4214138, %v1363_v31 }
 0xe67   : > { %v1365_v34 = vmul.f32 %v1364_v32, %v1359_v24 }
 0xe69   : > { %v1366_v35 = vadd.f32 -0.28449672, %v1365_v34 }
 0xe6b   : > { %v1367_v36 = vmul.f32 %v1366_v35, %v1359_v24 }
 0xe6d   : > { %v1368_v37 = vadd.f32 0.2548296, %v1367_v36 }
 0xe6f   : > { %v1369_v38 = vmul.f32 %v1368_v37, %v1359_v24 }
 0xe71   : > { %v1374_v41 = vmul.f32 %v1844_v40, %v1369_v38 }
 0xe73   : > { %v1375_v17 = vsub.f32 1.0, %v1374_v41 }
 0xe75   : > { %v1376_v43 = vmul.f32 %v1375_v17, %v1342_v42 }
 0xe77   : > { %v1377_v6 = vadd.f32 1.0, %v1376_v43 }
 0xe79   : > { %v1378_v15 = vmul.f32 %v1377_v6, %v1339_v21 }
 0xe7b   : > { %1645 = vmatmul.msk.f32.vlgmr.msra.gmra.mxu2 %vm963_vm13, %v1378_v15 }
 0xefe   : > { %v1402_v25 = vpop.f32.mrf.mxu2 }
 0xeff   : > { %v1403_v46 = vadd.f32 %v1794_v45, %v1402_v25 }
 0xf01   : > { %v1405_v47 = vadd.f32 %v1403_v46, %v2587_v59 }
 0xf03   : > { %v1406_v48 = vsel %vm631_vm0, %v1405_v47, 0.0 }
 0xf04   : > { %1407 = vadd.xlane.f32.xlu0 %v1406_v48 }
 0xf77   : > { %v1408_v49 = vpop.xlane.xlu0 %1407 }
 0xf78   : > { %v1409_v44 = vmul.f32 %v1408_v49, %v2429_v39 }
 0xf7a   : > { %v1410_v29 = vsub.f32 %v1405_v47, %v1409_v44 }
 0xf7c   : > { %v1411_v50 = vmul.f32 %v1410_v29, %v1410_v29 }
 0xf7e   : > { %v1412_v51 = vsel %vm631_vm0, %v1411_v50, 0.0 }
 0xf7f   : > { %1413 = vadd.xlane.f32.xlu1 %v1412_v51 }
 0xff2   : > { %v1414_v52 = vpop.xlane.xlu1 %1413 }
 0xff3   : > { %v1415_v53 = vmul.f32 %v1414_v52, %v2429_v39 }
 0xff5   : > { %v1416_v54 = vadd.f32 1e-05, %v1415_v53 }
 0xff7   : > { %1845 = vrsqrt.f32 %v1416_v54  ;;  %vm1423_vm11 = vweird.f32 %v1416_v54 }
 0xffd   : > { %v1846_v55 = vpop.eup %1845 }
 0xffe   : > { %v1418_v56 = vmul.f32 %v1846_v55, %v1416_v54  ;;  %vm1424_vm10 = vweird.f32 %v1846_v55 }
 0xfff   : > { %vm1425_vm12 = vmor %vm1423_vm11, %vm1424_vm10 }
0x1000   : > { %v1419_v57 = vmul.f32 %v1846_v55, %v1418_v56 }
0x1002   : > { %v1420_v58 = vmul.f32 0.5, %v1419_v57 }
0x1004   : > { %v1421_v59 = vsub.f32 1.5, %v1420_v58 }
0x1006   : > { %v1422_v60 = vmul.f32 %v1846_v55, %v1421_v59 }
0x1008   : > { %v1426_v39 = vsel %vm1425_vm12, %v1846_v55, %v1422_v60 }
0x1009   : > { %v1427_v62 = vmul.f32 %v1426_v39, %v1410_v29 }
0x100b   : > { %v1431_v0 = vmul.f32 %v1795_v61, %v1427_v62 }
0x100d   : > { %v1435_v1 = vadd.f32 %v1796_v63, %v1431_v0 }
0x100f   : > { %1436 = vst.msk [vmem:[%s592_s9] sm:$0xff] %vm631_vm0, %v1435_v1 }
0x1010   : > { %2054 = shalt.err (!%p2051_p9)
}
0x1011   : > { %1672 = dma.vmem_to_hbm [thread:$0]  (%p2292_p13), %s1451_s24, 128, %s1453_s2, %s1438_s25  }
0x1012 PF: > { %s1464_s27 = sand.u32 1, %s2093_s18   ;;  %p2719_p10 = scmp.ge.s32.totalorder %s2105_s21, 2 }
0x1013   : > { %s1465_s9 = scalar_lea.sflag [#allocation4], %s1464_s27 }
0x1014   : > { %p1695_p11 = pnand %p2719_p10, %p2297_p5 }
0x1016   : > { %p1696_p0 = pneg %p1695_p11 }
0x1018   : > { %2088 = dma.done.wait (%p1696_p0), %s1465_s9, 128  }
0x1019   : > { %2090 = vsyncadd (%p1696_p0), %s1465_s9, 4294967168  ;;  %p31_p2 = scmp.ge.s32.totalorder %s2272_s30, 4   ;;  %s2720_s18 = smov %s2097_s19 }
0x101a   : > { %s2721_s19 = smov %s2101_s20  ;;  %s2722_s20 = smov %s2284_s22 }
0x101b   : > { %s2723_s21 = smov %s2272_s30  ;;  %33 = sbr.rel (!%p31_p2) target bundleno = 18 (0x12), region = 157 }
0x1020   :  { %1471 = vsyncpa [#allocation3], 1 }
0x1021   :  { %1473 = vsyncpa [#allocation3 + $0x1], 1 }
0x1022   :  { %1474 = vsyncpa [#allocation6], 1 }
0x1023   :  { %1475 = vsyncpa [#allocation9], 1 }
0x1024   :  { %1476 = vsyncpa [#allocation12], 1 }
0x1025   :  { %1477 = vsyncpa [#allocation4], 1 }
0x1026   :  { %1479 = vsyncpa [#allocation4 + $0x1], 1 }

</bundles_post_ra>
